<compile_context>
chip_gen: v7x
topology: tpu7x:2x2x1
jax: 0.10.0
libtpu: 0.0.40
codegen_flags: <defaults>
</compile_context>

<pallas_src>
import functools
import math

import jax
import jax.numpy as jnp
from jax import lax
from jax.experimental import pallas as pl
from jax.experimental.pallas import tpu as pltpu


# ----------------------------------------------------------------------------
# Kernel
# ----------------------------------------------------------------------------
def basic_block_kernel(m_ref, x_ref, w1_ref, b1_ref, w2_ref, b2_ref, o_ref,
                       *, shifts):
    """Fused conv3x3 -> BN1 -> ReLU -> conv3x3 -> BN2 -> +x -> ReLU.

    m_ref : (9, L) 0/1 tap-validity masks (precomputed, lane-position only)
    x_ref : (C, L) lane-dense activations, L = images_per_step * H * W
    w*_ref: (9, C, C) per-tap weight matrices (eval-mode BN scale pre-folded)
    b*_ref: (C, 1) folded BN bias (float32)
    o_ref : (C, L) float32
    """
    L = x_ref.shape[-1]
    cdt = x_ref.dtype
    x = x_ref[...]                       # (C, L) compute dtype
    masks = m_ref[...]                   # (9, L) 0/1, compute dtype

    def conv(src, w_ref):
        acc = None
        for t, s in enumerate(shifts):
            # tap[:, q] = src[:, q + s]; wrapped / out-of-image lanes are
            # zeroed by the precomputed mask (also kills cross-image bleed).
            tap = src if s == 0 else pltpu.roll(src, (-s) % L, axis=1)
            tap = tap * masks[t:t + 1, :]                  # sublane broadcast
            part = jnp.dot(w_ref[t], tap,
                           preferred_element_type=jnp.float32)
            acc = part if acc is None else acc + part
        return acc                                          # (C, L) float32

    # conv1 (BN1 scale folded into weights) + BN1 bias + ReLU.
    out1 = jnp.maximum(conv(x, w1_ref) + b1_ref[...], 0.0)
    # dropout(p=0) is the identity.
    # conv2 (BN2 scale folded) + BN2 bias + residual + ReLU (f32 epilogue).
    out2 = conv(out1.astype(cdt), w2_ref) + b2_ref[...]
    o_ref[...] = jnp.maximum(out2 + x.astype(jnp.float32), 0.0).astype(o_ref.dtype)


# ----------------------------------------------------------------------------
# Wrapper helpers
# ----------------------------------------------------------------------------
def _device_config():
    try:
        kind = jax.devices()[0].device_kind.lower()
    except Exception:
        kind = ""
    is_v7 = ("v7" in kind) or ("7x" in kind)
    bf16_ok = is_v7 or ("v6" in kind)     # v5e keeps the elementwise path f32
    return dict(
        compute_dtype=jnp.bfloat16 if bf16_ok else jnp.float32,
        min_steps=2 if is_v7 else 1,                      # feed both v7x TCs
        vmem_budget=(12 << 20) if is_v7 else (24 << 20),  # per-step block budget
        vmem_limit=(40 << 20) if is_v7 else (80 << 20),   # explicit scoped limit
    )


def _plan_tiles(N, HW, C, cdt_bytes, vmem_budget, min_steps):
    """Pick images-per-step so L = imgs*HW is 128-aligned and fits VMEM."""
    period = 128 // math.gcd(HW, 128)     # min imgs with imgs*HW % 128 == 0
    per_lane = (C * (2 * cdt_bytes + 2 * 4)   # double-buffered in/out blocks
                + 9 * 2 * cdt_bytes           # (9, L) masks
                + 8 * C * 4)                  # live f32 intermediates
    budget_imgs = max(1, int(vmem_budget // (per_lane * HW)))
    imgs = max(1, min(N, budget_imgs))
    if min_steps > 1:                          # keep >= min_steps parallel steps
        imgs = min(imgs, max(1, -(-N // min_steps)))
    if (imgs * HW) % 128 != 0:
        if imgs > period:
            imgs = (imgs // period) * period
        elif period <= budget_imgs:
            imgs = period                      # pad batch up to one period
        else:
            imgs = N                           # last resort: single full block
    n_pad = -(-N // imgs) * imgs
    return imgs, n_pad


def _fold_bn(w_oihw, bn_params, eps, cdt):
    """Fold eval-mode BN scale into the bias-free conv weight (exact)."""
    g, b, rm, rv = bn_params
    s = g / jnp.sqrt(rv + eps)
    bias = (b - rm * s).astype(jnp.float32).reshape(-1, 1)
    w = w_oihw.astype(jnp.float32) * s[:, None, None, None]
    co, ci = w.shape[0], w.shape[1]
    # OIHW -> (kh, kw, O, I) -> (9, O, I); tap order t = kh*3 + kw.
    w9 = jnp.transpose(w, (2, 3, 0, 1)).reshape(9, co, ci).astype(cdt)
    return w9, bias


def _tap_masks(H, W, imgs, cdt):
    """(9, imgs*H*W) 0/1 validity masks, one row per 3x3 tap."""
    HW = H * W
    L = imgs * HW
    lane = jnp.arange(L, dtype=jnp.int32)
    hpos = (lane % HW) // W
    wpos = lane % W
    rows = []
    for dy in (-1, 0, 1):
        for dx in (-1, 0, 1):
            v = ((hpos + dy >= 0) & (hpos + dy < H)
                 & (wpos + dx >= 0) & (wpos + dx < W))
            rows.append(v)
    return jnp.stack(rows, axis=0).astype(cdt)


# ----------------------------------------------------------------------------
# Public entry points
# ----------------------------------------------------------------------------
def basic_block_2d(x2d, w1_oihw, bn1, w2_oihw, bn2, H, W, eps=1e-5):
    """Lane-dense BasicBlock: x2d is (C, N*H*W) -> (C, N*H*W) float32.

    Keep activations in this layout across consecutive BasicBlocks to amortize
    the NCHW <-> lane-dense transposes (once per stage, not per block).
    """
    cfg = _device_config()
    cdt = cfg["compute_dtype"]
    cdt_bytes = jnp.dtype(cdt).itemsize

    C, NL = x2d.shape
    HW = H * W
    N = NL // HW

    imgs, n_pad = _plan_tiles(N, HW, C, cdt_bytes,
                              cfg["vmem_budget"], cfg["min_steps"])
    L = imgs * HW
    grid = (n_pad // imgs,)

    x2d = x2d.astype(cdt)
    if n_pad != N:                      # pad with zero images (discarded later)
        x2d = jnp.pad(x2d, ((0, 0), (0, (n_pad - N) * HW)))

    w19, b1 = _fold_bn(w1_oihw, bn1, eps, cdt)
    w29, b2 = _fold_bn(w2_oihw, bn2, eps, cdt)
    masks = _tap_masks(H, W, imgs, cdt)
    shifts = tuple(dy * W + dx for dy in (-1, 0, 1) for dx in (-1, 0, 1))

    kernel = functools.partial(basic_block_kernel, shifts=shifts)
    out2d = pl.pallas_call(
        kernel,
        out_shape=jax.ShapeDtypeStruct((C, n_pad * HW), jnp.float32),
        grid_spec=pltpu.PrefetchScalarGridSpec(
            num_scalar_prefetch=0,
            grid=grid,
            in_specs=[
                pl.BlockSpec((9, L), lambda i: (0, 0)),          # tap masks
                pl.BlockSpec((C, L), lambda i: (0, i)),          # x
                pl.BlockSpec((9, C, C), lambda i: (0, 0, 0)),    # w1 (BN folded)
                pl.BlockSpec((C, 1), lambda i: (0, 0)),          # b1
                pl.BlockSpec((9, C, C), lambda i: (0, 0, 0)),    # w2 (BN folded)
                pl.BlockSpec((C, 1), lambda i: (0, 0)),          # b2
            ],
            out_specs=pl.BlockSpec((C, L), lambda i: (0, i)),
        ),
        compiler_params=pltpu.CompilerParams(
            dimension_semantics=("parallel",),
            vmem_limit_bytes=cfg["vmem_limit"]),
    )(masks, x2d, w19, b1, w29, b2)

    return out2d[:, :N * HW]


def basic_block(x_nchw, w1_oihw, bn1, w2_oihw, bn2, eps=1e-5):
    """BasicBlock forward (eval-mode BN), stride=1, no downsample.

    x_nchw : (N, C, H, W) float32 (PyTorch layout).
    w*_oihw: (C, C, 3, 3) float32 conv weights (bias=False).
    bn*    : tuple (gamma, beta, running_mean, running_var), each (C,).
    """
    N, C, H, W = x_nchw.shape
    x2d = jnp.transpose(x_nchw, (1, 0, 2, 3)).reshape(C, N * H * W)
    out2d = basic_block_2d(x2d, w1_oihw, bn1, w2_oihw, bn2, H, W, eps)
    return jnp.transpose(out2d.reshape(C, N, H, W), (1, 0, 2, 3))


# ----------------------------------------------------------------------------
# Pure-JAX reference and self-test
# ----------------------------------------------------------------------------
def reference_forward(x, w1, bn1, w2, bn2, eps=1e-5):
    """Pure-JAX reference (NCHW / OIHW, eval-mode BN)."""
    def bn_apply(y, p):
        g, b, rm, rv = p
        inv = g / jnp.sqrt(rv + eps)
        return (y - rm[None, :, None, None]) * inv[None, :, None, None] \
            + b[None, :, None, None]

    dn = ("NCHW", "OIHW", "NCHW")
    o = lax.conv_general_dilated(x, w1, (1, 1), "SAME", dimension_numbers=dn,
                                 precision=lax.Precision.HIGHEST)
    o = jnp.maximum(bn_apply(o, bn1), 0.0)
    o = lax.conv_general_dilated(o, w2, (1, 1), "SAME", dimension_numbers=dn,
                                 precision=lax.Precision.HIGHEST)
    return jnp.maximum(bn_apply(o, bn2) + x, 0.0)


if __name__ == "__main__":
    key = jax.random.PRNGKey(0)
    ks = jax.random.split(key, 11)

    # Small shapes: batch=2, inplanes=planes=8, spatial=16x16, stride=1.
    N, C, H, W = 2, 8, 16, 16

    x = jax.random.normal(ks[0], (N, C, H, W), jnp.float32)

    w_scale = (2.0 / (9 * C)) ** 0.5
    w1 = jax.random.normal(ks[1], (C, C, 3, 3), jnp.float32) * w_scale
    w2 = jax.random.normal(ks[2], (C, C, 3, 3), jnp.float32) * w_scale

    bn1 = (1.0 + 0.1 * jax.random.normal(ks[3], (C,), jnp.float32),
           0.1 * jax.random.normal(ks[4], (C,), jnp.float32),
           0.05 * jax.random.normal(ks[5], (C,), jnp.float32),
           0.5 + jax.random.uniform(ks[6], (C,), jnp.float32))
    bn2 = (1.0 + 0.1 * jax.random.normal(ks[7], (C,), jnp.float32),
           0.1 * jax.random.normal(ks[8], (C,), jnp.float32),
           0.05 * jax.random.normal(ks[9], (C,), jnp.float32),
           0.5 + jax.random.uniform(ks[10], (C,), jnp.float32))

    out = jax.block_until_ready(basic_block(x, w1, bn1, w2, bn2))
    ref = jax.block_until_ready(reference_forward(x, w1, bn1, w2, bn2))

    assert out.shape == (N, C, H, W)
    err = jnp.abs(out - ref)
    max_err = float(jnp.max(err))
    mean_err = float(jnp.mean(err))

    if _device_config()["compute_dtype"] == jnp.float32:
        assert max_err < 1e-3, f"mismatch vs reference: max_err={max_err}"
    else:
        # bf16 compute (f32 accumulation / epilogue): looser but tight-ish.
        assert max_err < 1e-1 and mean_err < 1e-2, \
            f"mismatch vs reference: max_err={max_err} mean_err={mean_err}"

    print("KERNEL_OK")
</pallas_src>

<mosaic_0001>
module attributes {stable_mosaic.version = 11 : i64} {
  func.func @basic_block_kernel(%arg0: i32, %arg1: memref<9x512xf32, #tpu.memory_space<vmem>>, %arg2: memref<8x512xf32, #tpu.memory_space<vmem>>, %arg3: memref<9x8x8xf32, #tpu.memory_space<vmem>>, %arg4: memref<8x1xf32, #tpu.memory_space<vmem>>, %arg5: memref<9x8x8xf32, #tpu.memory_space<vmem>>, %arg6: memref<8x1xf32, #tpu.memory_space<vmem>>, %arg7: memref<8x512xf32, #tpu.memory_space<vmem>>) attributes {dimension_semantics = [#tpu.dimension_semantics<parallel>], iteration_bounds = array<i64: 1>, scalar_prefetch = 0 : i64, scratch_operands = 0 : i64, tpu.core_type = #tpu.core_type<tc>, window_params = [{pipeline_mode = #tpu.pipeline_mode<synchronous>, transform_indices = @transform_0, window_bounds = array<i64: 9, 512>}, {transform_indices = @transform_1, window_bounds = array<i64: 8, 512>}, {pipeline_mode = #tpu.pipeline_mode<synchronous>, transform_indices = @transform_2, window_bounds = array<i64: 9, 8, 8>}, {pipeline_mode = #tpu.pipeline_mode<synchronous>, transform_indices = @transform_3, window_bounds = array<i64: 8, 1>}, {pipeline_mode = #tpu.pipeline_mode<synchronous>, transform_indices = @transform_4, window_bounds = array<i64: 9, 8, 8>}, {pipeline_mode = #tpu.pipeline_mode<synchronous>, transform_indices = @transform_5, window_bounds = array<i64: 8, 1>}, {transform_indices = @transform_6, window_bounds = array<i64: 8, 512>}]} {
    %c0 = arith.constant 0 : index
    %c0_0 = arith.constant 0 : index
    %0 = vector.load %arg2[%c0, %c0_0] : memref<8x512xf32, #tpu.memory_space<vmem>>, vector<8x512xf32>
    %c0_1 = arith.constant 0 : index
    %c0_2 = arith.constant 0 : index
    %1 = vector.load %arg1[%c0_1, %c0_2] : memref<9x512xf32, #tpu.memory_space<vmem>>, vector<9x512xf32>
    %c17_i32 = arith.constant 17 : i32
    %2 = tpu.dynamic_rotate %0 by %c17_i32 dim 1 : vector<8x512xf32>, i32 -> vector<8x512xf32>
    %3 = vector.extract_strided_slice %1 {offsets = [0, 0], sizes = [1, 512], strides = [1, 1]} : vector<9x512xf32> to vector<1x512xf32>
    %4 = vector.broadcast %3 : vector<1x512xf32> to vector<8x512xf32>
    %5 = arith.mulf %2, %4 : vector<8x512xf32>
    %c0_3 = arith.constant 0 : index
    %c0_4 = arith.constant 0 : index
    %c0_5 = arith.constant 0 : index
    %6 = vector.load %arg3[%c0_3, %c0_4, %c0_5] : memref<9x8x8xf32, #tpu.memory_space<vmem>>, vector<1x8x8xf32>
    %7 = vector.shape_cast %6 : vector<1x8x8xf32> to vector<8x8xf32>
    %cst = arith.constant dense<0.000000e+00> : vector<8x512xf32>
    %8 = tpu.matmul %7, %5, %cst {dimension_numbers = #tpu.dot_dimension_numbers<[1], [0], [0], [1], [0, 0, 1, 1], [], []>} : vector<8x8xf32>, vector<8x512xf32>, vector<8x512xf32> -> vector<8x512xf32>
    %c16_i32 = arith.constant 16 : i32
    %9 = tpu.dynamic_rotate %0 by %c16_i32 dim 1 : vector<8x512xf32>, i32 -> vector<8x512xf32>
    %10 = vector.extract_strided_slice %1 {offsets = [1, 0], sizes = [1, 512], strides = [1, 1]} : vector<9x512xf32> to vector<1x512xf32>
    %11 = vector.broadcast %10 : vector<1x512xf32> to vector<8x512xf32>
    %12 = arith.mulf %9, %11 : vector<8x512xf32>
    %c1 = arith.constant 1 : index
    %c0_6 = arith.constant 0 : index
    %c0_7 = arith.constant 0 : index
    %13 = vector.load %arg3[%c1, %c0_6, %c0_7] : memref<9x8x8xf32, #tpu.memory_space<vmem>>, vector<1x8x8xf32>
    %14 = vector.shape_cast %13 : vector<1x8x8xf32> to vector<8x8xf32>
    %cst_8 = arith.constant dense<0.000000e+00> : vector<8x512xf32>
    %15 = tpu.matmul %14, %12, %cst_8 {dimension_numbers = #tpu.dot_dimension_numbers<[1], [0], [0], [1], [0, 0, 1, 1], [], []>} : vector<8x8xf32>, vector<8x512xf32>, vector<8x512xf32> -> vector<8x512xf32>
    %16 = arith.addf %8, %15 : vector<8x512xf32>
    %c15_i32 = arith.constant 15 : i32
    %17 = tpu.dynamic_rotate %0 by %c15_i32 dim 1 : vector<8x512xf32>, i32 -> vector<8x512xf32>
    %18 = vector.extract_strided_slice %1 {offsets = [2, 0], sizes = [1, 512], strides = [1, 1]} : vector<9x512xf32> to vector<1x512xf32>
    %19 = vector.broadcast %18 : vector<1x512xf32> to vector<8x512xf32>
    %20 = arith.mulf %17, %19 : vector<8x512xf32>
    %c2 = arith.constant 2 : index
    %c0_9 = arith.constant 0 : index
    %c0_10 = arith.constant 0 : index
    %21 = vector.load %arg3[%c2, %c0_9, %c0_10] : memref<9x8x8xf32, #tpu.memory_space<vmem>>, vector<1x8x8xf32>
    %22 = vector.shape_cast %21 : vector<1x8x8xf32> to vector<8x8xf32>
    %cst_11 = arith.constant dense<0.000000e+00> : vector<8x512xf32>
    %23 = tpu.matmul %22, %20, %cst_11 {dimension_numbers = #tpu.dot_dimension_numbers<[1], [0], [0], [1], [0, 0, 1, 1], [], []>} : vector<8x8xf32>, vector<8x512xf32>, vector<8x512xf32> -> vector<8x512xf32>
    %24 = arith.addf %16, %23 : vector<8x512xf32>
    %c1_i32 = arith.constant 1 : i32
    %25 = tpu.dynamic_rotate %0 by %c1_i32 dim 1 : vector<8x512xf32>, i32 -> vector<8x512xf32>
    %26 = vector.extract_strided_slice %1 {offsets = [3, 0], sizes = [1, 512], strides = [1, 1]} : vector<9x512xf32> to vector<1x512xf32>
    %27 = vector.broadcast %26 : vector<1x512xf32> to vector<8x512xf32>
    %28 = arith.mulf %25, %27 : vector<8x512xf32>
    %c3 = arith.constant 3 : index
    %c0_12 = arith.constant 0 : index
    %c0_13 = arith.constant 0 : index
    %29 = vector.load %arg3[%c3, %c0_12, %c0_13] : memref<9x8x8xf32, #tpu.memory_space<vmem>>, vector<1x8x8xf32>
    %30 = vector.shape_cast %29 : vector<1x8x8xf32> to vector<8x8xf32>
    %cst_14 = arith.constant dense<0.000000e+00> : vector<8x512xf32>
    %31 = tpu.matmul %30, %28, %cst_14 {dimension_numbers = #tpu.dot_dimension_numbers<[1], [0], [0], [1], [0, 0, 1, 1], [], []>} : vector<8x8xf32>, vector<8x512xf32>, vector<8x512xf32> -> vector<8x512xf32>
    %32 = arith.addf %24, %31 : vector<8x512xf32>
    %33 = vector.extract_strided_slice %1 {offsets = [4, 0], sizes = [1, 512], strides = [1, 1]} : vector<9x512xf32> to vector<1x512xf32>
    %34 = vector.broadcast %33 : vector<1x512xf32> to vector<8x512xf32>
    %35 = arith.mulf %0, %34 : vector<8x512xf32>
    %c4 = arith.constant 4 : index
    %c0_15 = arith.constant 0 : index
    %c0_16 = arith.constant 0 : index
    %36 = vector.load %arg3[%c4, %c0_15, %c0_16] : memref<9x8x8xf32, #tpu.memory_space<vmem>>, vector<1x8x8xf32>
    %37 = vector.shape_cast %36 : vector<1x8x8xf32> to vector<8x8xf32>
    %cst_17 = arith.constant dense<0.000000e+00> : vector<8x512xf32>
    %38 = tpu.matmul %37, %35, %cst_17 {dimension_numbers = #tpu.dot_dimension_numbers<[1], [0], [0], [1], [0, 0, 1, 1], [], []>} : vector<8x8xf32>, vector<8x512xf32>, vector<8x512xf32> -> vector<8x512xf32>
    %39 = arith.addf %32, %38 : vector<8x512xf32>
    %c511_i32 = arith.constant 511 : i32
    %40 = tpu.dynamic_rotate %0 by %c511_i32 dim 1 : vector<8x512xf32>, i32 -> vector<8x512xf32>
    %41 = vector.extract_strided_slice %1 {offsets = [5, 0], sizes = [1, 512], strides = [1, 1]} : vector<9x512xf32> to vector<1x512xf32>
    %42 = vector.broadcast %41 : vector<1x512xf32> to vector<8x512xf32>
    %43 = arith.mulf %40, %42 : vector<8x512xf32>
    %c5 = arith.constant 5 : index
    %c0_18 = arith.constant 0 : index
    %c0_19 = arith.constant 0 : index
    %44 = vector.load %arg3[%c5, %c0_18, %c0_19] : memref<9x8x8xf32, #tpu.memory_space<vmem>>, vector<1x8x8xf32>
    %45 = vector.shape_cast %44 : vector<1x8x8xf32> to vector<8x8xf32>
    %cst_20 = arith.constant dense<0.000000e+00> : vector<8x512xf32>
    %46 = tpu.matmul %45, %43, %cst_20 {dimension_numbers = #tpu.dot_dimension_numbers<[1], [0], [0], [1], [0, 0, 1, 1], [], []>} : vector<8x8xf32>, vector<8x512xf32>, vector<8x512xf32> -> vector<8x512xf32>
    %47 = arith.addf %39, %46 : vector<8x512xf32>
    %c497_i32 = arith.constant 497 : i32
    %48 = tpu.dynamic_rotate %0 by %c497_i32 dim 1 : vector<8x512xf32>, i32 -> vector<8x512xf32>
    %49 = vector.extract_strided_slice %1 {offsets = [6, 0], sizes = [1, 512], strides = [1, 1]} : vector<9x512xf32> to vector<1x512xf32>
    %50 = vector.broadcast %49 : vector<1x512xf32> to vector<8x512xf32>
    %51 = arith.mulf %48, %50 : vector<8x512xf32>
    %c6 = arith.constant 6 : index
    %c0_21 = arith.constant 0 : index
    %c0_22 = arith.constant 0 : index
    %52 = vector.load %arg3[%c6, %c0_21, %c0_22] : memref<9x8x8xf32, #tpu.memory_space<vmem>>, vector<1x8x8xf32>
    %53 = vector.shape_cast %52 : vector<1x8x8xf32> to vector<8x8xf32>
    %cst_23 = arith.constant dense<0.000000e+00> : vector<8x512xf32>
    %54 = tpu.matmul %53, %51, %cst_23 {dimension_numbers = #tpu.dot_dimension_numbers<[1], [0], [0], [1], [0, 0, 1, 1], [], []>} : vector<8x8xf32>, vector<8x512xf32>, vector<8x512xf32> -> vector<8x512xf32>
    %55 = arith.addf %47, %54 : vector<8x512xf32>
    %c496_i32 = arith.constant 496 : i32
    %56 = tpu.dynamic_rotate %0 by %c496_i32 dim 1 : vector<8x512xf32>, i32 -> vector<8x512xf32>
    %57 = vector.extract_strided_slice %1 {offsets = [7, 0], sizes = [1, 512], strides = [1, 1]} : vector<9x512xf32> to vector<1x512xf32>
    %58 = vector.broadcast %57 : vector<1x512xf32> to vector<8x512xf32>
    %59 = arith.mulf %56, %58 : vector<8x512xf32>
    %c7 = arith.constant 7 : index
    %c0_24 = arith.constant 0 : index
    %c0_25 = arith.constant 0 : index
    %60 = vector.load %arg3[%c7, %c0_24, %c0_25] : memref<9x8x8xf32, #tpu.memory_space<vmem>>, vector<1x8x8xf32>
    %61 = vector.shape_cast %60 : vector<1x8x8xf32> to vector<8x8xf32>
    %cst_26 = arith.constant dense<0.000000e+00> : vector<8x512xf32>
    %62 = tpu.matmul %61, %59, %cst_26 {dimension_numbers = #tpu.dot_dimension_numbers<[1], [0], [0], [1], [0, 0, 1, 1], [], []>} : vector<8x8xf32>, vector<8x512xf32>, vector<8x512xf32> -> vector<8x512xf32>
    %63 = arith.addf %55, %62 : vector<8x512xf32>
    %c495_i32 = arith.constant 495 : i32
    %64 = tpu.dynamic_rotate %0 by %c495_i32 dim 1 : vector<8x512xf32>, i32 -> vector<8x512xf32>
    %65 = vector.extract_strided_slice %1 {offsets = [8, 0], sizes = [1, 512], strides = [1, 1]} : vector<9x512xf32> to vector<1x512xf32>
    %66 = vector.broadcast %65 : vector<1x512xf32> to vector<8x512xf32>
    %67 = arith.mulf %64, %66 : vector<8x512xf32>
    %c8 = arith.constant 8 : index
    %c0_27 = arith.constant 0 : index
    %c0_28 = arith.constant 0 : index
    %68 = vector.load %arg3[%c8, %c0_27, %c0_28] : memref<9x8x8xf32, #tpu.memory_space<vmem>>, vector<1x8x8xf32>
    %69 = vector.shape_cast %68 : vector<1x8x8xf32> to vector<8x8xf32>
    %cst_29 = arith.constant dense<0.000000e+00> : vector<8x512xf32>
    %70 = tpu.matmul %69, %67, %cst_29 {dimension_numbers = #tpu.dot_dimension_numbers<[1], [0], [0], [1], [0, 0, 1, 1], [], []>} : vector<8x8xf32>, vector<8x512xf32>, vector<8x512xf32> -> vector<8x512xf32>
    %71 = arith.addf %63, %70 : vector<8x512xf32>
    %c0_30 = arith.constant 0 : index
    %c0_31 = arith.constant 0 : index
    %72 = vector.load %arg4[%c0_30, %c0_31] : memref<8x1xf32, #tpu.memory_space<vmem>>, vector<8x1xf32>
    %73 = vector.broadcast %72 : vector<8x1xf32> to vector<8x512xf32>
    %74 = arith.addf %71, %73 : vector<8x512xf32>
    %cst_32 = arith.constant 0.000000e+00 : f32
    %75 = vector.broadcast %cst_32 : f32 to vector<8x512xf32>
    %76 = arith.maximumf %74, %75 : vector<8x512xf32>
    %c17_i32_33 = arith.constant 17 : i32
    %77 = tpu.dynamic_rotate %76 by %c17_i32_33 dim 1 : vector<8x512xf32>, i32 -> vector<8x512xf32>
    %78 = vector.extract_strided_slice %1 {offsets = [0, 0], sizes = [1, 512], strides = [1, 1]} : vector<9x512xf32> to vector<1x512xf32>
    %79 = vector.broadcast %78 : vector<1x512xf32> to vector<8x512xf32>
    %80 = arith.mulf %77, %79 : vector<8x512xf32>
    %c0_34 = arith.constant 0 : index
    %c0_35 = arith.constant 0 : index
    %c0_36 = arith.constant 0 : index
    %81 = vector.load %arg5[%c0_34, %c0_35, %c0_36] : memref<9x8x8xf32, #tpu.memory_space<vmem>>, vector<1x8x8xf32>
    %82 = vector.shape_cast %81 : vector<1x8x8xf32> to vector<8x8xf32>
    %cst_37 = arith.constant dense<0.000000e+00> : vector<8x512xf32>
    %83 = tpu.matmul %82, %80, %cst_37 {dimension_numbers = #tpu.dot_dimension_numbers<[1], [0], [0], [1], [0, 0, 1, 1], [], []>} : vector<8x8xf32>, vector<8x512xf32>, vector<8x512xf32> -> vector<8x512xf32>
    %c16_i32_38 = arith.constant 16 : i32
    %84 = tpu.dynamic_rotate %76 by %c16_i32_38 dim 1 : vector<8x512xf32>, i32 -> vector<8x512xf32>
    %85 = vector.extract_strided_slice %1 {offsets = [1, 0], sizes = [1, 512], strides = [1, 1]} : vector<9x512xf32> to vector<1x512xf32>
    %86 = vector.broadcast %85 : vector<1x512xf32> to vector<8x512xf32>
    %87 = arith.mulf %84, %86 : vector<8x512xf32>
    %c1_39 = arith.constant 1 : index
    %c0_40 = arith.constant 0 : index
    %c0_41 = arith.constant 0 : index
    %88 = vector.load %arg5[%c1_39, %c0_40, %c0_41] : memref<9x8x8xf32, #tpu.memory_space<vmem>>, vector<1x8x8xf32>
    %89 = vector.shape_cast %88 : vector<1x8x8xf32> to vector<8x8xf32>
    %cst_42 = arith.constant dense<0.000000e+00> : vector<8x512xf32>
    %90 = tpu.matmul %89, %87, %cst_42 {dimension_numbers = #tpu.dot_dimension_numbers<[1], [0], [0], [1], [0, 0, 1, 1], [], []>} : vector<8x8xf32>, vector<8x512xf32>, vector<8x512xf32> -> vector<8x512xf32>
    %91 = arith.addf %83, %90 : vector<8x512xf32>
    %c15_i32_43 = arith.constant 15 : i32
    %92 = tpu.dynamic_rotate %76 by %c15_i32_43 dim 1 : vector<8x512xf32>, i32 -> vector<8x512xf32>
    %93 = vector.extract_strided_slice %1 {offsets = [2, 0], sizes = [1, 512], strides = [1, 1]} : vector<9x512xf32> to vector<1x512xf32>
    %94 = vector.broadcast %93 : vector<1x512xf32> to vector<8x512xf32>
    %95 = arith.mulf %92, %94 : vector<8x512xf32>
    %c2_44 = arith.constant 2 : index
    %c0_45 = arith.constant 0 : index
    %c0_46 = arith.constant 0 : index
    %96 = vector.load %arg5[%c2_44, %c0_45, %c0_46] : memref<9x8x8xf32, #tpu.memory_space<vmem>>, vector<1x8x8xf32>
    %97 = vector.shape_cast %96 : vector<1x8x8xf32> to vector<8x8xf32>
    %cst_47 = arith.constant dense<0.000000e+00> : vector<8x512xf32>
    %98 = tpu.matmul %97, %95, %cst_47 {dimension_numbers = #tpu.dot_dimension_numbers<[1], [0], [0], [1], [0, 0, 1, 1], [], []>} : vector<8x8xf32>, vector<8x512xf32>, vector<8x512xf32> -> vector<8x512xf32>
    %99 = arith.addf %91, %98 : vector<8x512xf32>
    %c1_i32_48 = arith.constant 1 : i32
    %100 = tpu.dynamic_rotate %76 by %c1_i32_48 dim 1 : vector<8x512xf32>, i32 -> vector<8x512xf32>
    %101 = vector.extract_strided_slice %1 {offsets = [3, 0], sizes = [1, 512], strides = [1, 1]} : vector<9x512xf32> to vector<1x512xf32>
    %102 = vector.broadcast %101 : vector<1x512xf32> to vector<8x512xf32>
    %103 = arith.mulf %100, %102 : vector<8x512xf32>
    %c3_49 = arith.constant 3 : index
    %c0_50 = arith.constant 0 : index
    %c0_51 = arith.constant 0 : index
    %104 = vector.load %arg5[%c3_49, %c0_50, %c0_51] : memref<9x8x8xf32, #tpu.memory_space<vmem>>, vector<1x8x8xf32>
    %105 = vector.shape_cast %104 : vector<1x8x8xf32> to vector<8x8xf32>
    %cst_52 = arith.constant dense<0.000000e+00> : vector<8x512xf32>
    %106 = tpu.matmul %105, %103, %cst_52 {dimension_numbers = #tpu.dot_dimension_numbers<[1], [0], [0], [1], [0, 0, 1, 1], [], []>} : vector<8x8xf32>, vector<8x512xf32>, vector<8x512xf32> -> vector<8x512xf32>
    %107 = arith.addf %99, %106 : vector<8x512xf32>
    %108 = vector.extract_strided_slice %1 {offsets = [4, 0], sizes = [1, 512], strides = [1, 1]} : vector<9x512xf32> to vector<1x512xf32>
    %109 = vector.broadcast %108 : vector<1x512xf32> to vector<8x512xf32>
    %110 = arith.mulf %76, %109 : vector<8x512xf32>
    %c4_53 = arith.constant 4 : index
    %c0_54 = arith.constant 0 : index
    %c0_55 = arith.constant 0 : index
    %111 = vector.load %arg5[%c4_53, %c0_54, %c0_55] : memref<9x8x8xf32, #tpu.memory_space<vmem>>, vector<1x8x8xf32>
    %112 = vector.shape_cast %111 : vector<1x8x8xf32> to vector<8x8xf32>
    %cst_56 = arith.constant dense<0.000000e+00> : vector<8x512xf32>
    %113 = tpu.matmul %112, %110, %cst_56 {dimension_numbers = #tpu.dot_dimension_numbers<[1], [0], [0], [1], [0, 0, 1, 1], [], []>} : vector<8x8xf32>, vector<8x512xf32>, vector<8x512xf32> -> vector<8x512xf32>
    %114 = arith.addf %107, %113 : vector<8x512xf32>
    %c511_i32_57 = arith.constant 511 : i32
    %115 = tpu.dynamic_rotate %76 by %c511_i32_57 dim 1 : vector<8x512xf32>, i32 -> vector<8x512xf32>
    %116 = vector.extract_strided_slice %1 {offsets = [5, 0], sizes = [1, 512], strides = [1, 1]} : vector<9x512xf32> to vector<1x512xf32>
    %117 = vector.broadcast %116 : vector<1x512xf32> to vector<8x512xf32>
    %118 = arith.mulf %115, %117 : vector<8x512xf32>
    %c5_58 = arith.constant 5 : index
    %c0_59 = arith.constant 0 : index
    %c0_60 = arith.constant 0 : index
    %119 = vector.load %arg5[%c5_58, %c0_59, %c0_60] : memref<9x8x8xf32, #tpu.memory_space<vmem>>, vector<1x8x8xf32>
    %120 = vector.shape_cast %119 : vector<1x8x8xf32> to vector<8x8xf32>
    %cst_61 = arith.constant dense<0.000000e+00> : vector<8x512xf32>
    %121 = tpu.matmul %120, %118, %cst_61 {dimension_numbers = #tpu.dot_dimension_numbers<[1], [0], [0], [1], [0, 0, 1, 1], [], []>} : vector<8x8xf32>, vector<8x512xf32>, vector<8x512xf32> -> vector<8x512xf32>
    %122 = arith.addf %114, %121 : vector<8x512xf32>
    %c497_i32_62 = arith.constant 497 : i32
    %123 = tpu.dynamic_rotate %76 by %c497_i32_62 dim 1 : vector<8x512xf32>, i32 -> vector<8x512xf32>
    %124 = vector.extract_strided_slice %1 {offsets = [6, 0], sizes = [1, 512], strides = [1, 1]} : vector<9x512xf32> to vector<1x512xf32>
    %125 = vector.broadcast %124 : vector<1x512xf32> to vector<8x512xf32>
    %126 = arith.mulf %123, %125 : vector<8x512xf32>
    %c6_63 = arith.constant 6 : index
    %c0_64 = arith.constant 0 : index
    %c0_65 = arith.constant 0 : index
    %127 = vector.load %arg5[%c6_63, %c0_64, %c0_65] : memref<9x8x8xf32, #tpu.memory_space<vmem>>, vector<1x8x8xf32>
    %128 = vector.shape_cast %127 : vector<1x8x8xf32> to vector<8x8xf32>
    %cst_66 = arith.constant dense<0.000000e+00> : vector<8x512xf32>
    %129 = tpu.matmul %128, %126, %cst_66 {dimension_numbers = #tpu.dot_dimension_numbers<[1], [0], [0], [1], [0, 0, 1, 1], [], []>} : vector<8x8xf32>, vector<8x512xf32>, vector<8x512xf32> -> vector<8x512xf32>
    %130 = arith.addf %122, %129 : vector<8x512xf32>
    %c496_i32_67 = arith.constant 496 : i32
    %131 = tpu.dynamic_rotate %76 by %c496_i32_67 dim 1 : vector<8x512xf32>, i32 -> vector<8x512xf32>
    %132 = vector.extract_strided_slice %1 {offsets = [7, 0], sizes = [1, 512], strides = [1, 1]} : vector<9x512xf32> to vector<1x512xf32>
    %133 = vector.broadcast %132 : vector<1x512xf32> to vector<8x512xf32>
    %134 = arith.mulf %131, %133 : vector<8x512xf32>
    %c7_68 = arith.constant 7 : index
    %c0_69 = arith.constant 0 : index
    %c0_70 = arith.constant 0 : index
    %135 = vector.load %arg5[%c7_68, %c0_69, %c0_70] : memref<9x8x8xf32, #tpu.memory_space<vmem>>, vector<1x8x8xf32>
    %136 = vector.shape_cast %135 : vector<1x8x8xf32> to vector<8x8xf32>
    %cst_71 = arith.constant dense<0.000000e+00> : vector<8x512xf32>
    %137 = tpu.matmul %136, %134, %cst_71 {dimension_numbers = #tpu.dot_dimension_numbers<[1], [0], [0], [1], [0, 0, 1, 1], [], []>} : vector<8x8xf32>, vector<8x512xf32>, vector<8x512xf32> -> vector<8x512xf32>
    %138 = arith.addf %130, %137 : vector<8x512xf32>
    %c495_i32_72 = arith.constant 495 : i32
    %139 = tpu.dynamic_rotate %76 by %c495_i32_72 dim 1 : vector<8x512xf32>, i32 -> vector<8x512xf32>
    %140 = vector.extract_strided_slice %1 {offsets = [8, 0], sizes = [1, 512], strides = [1, 1]} : vector<9x512xf32> to vector<1x512xf32>
    %141 = vector.broadcast %140 : vector<1x512xf32> to vector<8x512xf32>
    %142 = arith.mulf %139, %141 : vector<8x512xf32>
    %c8_73 = arith.constant 8 : index
    %c0_74 = arith.constant 0 : index
    %c0_75 = arith.constant 0 : index
    %143 = vector.load %arg5[%c8_73, %c0_74, %c0_75] : memref<9x8x8xf32, #tpu.memory_space<vmem>>, vector<1x8x8xf32>
    %144 = vector.shape_cast %143 : vector<1x8x8xf32> to vector<8x8xf32>
    %cst_76 = arith.constant dense<0.000000e+00> : vector<8x512xf32>
    %145 = tpu.matmul %144, %142, %cst_76 {dimension_numbers = #tpu.dot_dimension_numbers<[1], [0], [0], [1], [0, 0, 1, 1], [], []>} : vector<8x8xf32>, vector<8x512xf32>, vector<8x512xf32> -> vector<8x512xf32>
    %146 = arith.addf %138, %145 : vector<8x512xf32>
    %c0_77 = arith.constant 0 : index
    %c0_78 = arith.constant 0 : index
    %147 = vector.load %arg6[%c0_77, %c0_78] : memref<8x1xf32, #tpu.memory_space<vmem>>, vector<8x1xf32>
    %148 = vector.broadcast %147 : vector<8x1xf32> to vector<8x512xf32>
    %149 = arith.addf %146, %148 : vector<8x512xf32>
    %150 = arith.addf %149, %0 : vector<8x512xf32>
    %cst_79 = arith.constant 0.000000e+00 : f32
    %151 = vector.broadcast %cst_79 : f32 to vector<8x512xf32>
    %152 = arith.maximumf %150, %151 : vector<8x512xf32>
    %c0_80 = arith.constant 0 : index
    %c0_81 = arith.constant 0 : index
    %153 = vector.load %arg7[%c0_80, %c0_81] : memref<8x512xf32, #tpu.memory_space<vmem>>, vector<8x512xf32>
    tpu.vector_store %arg7[%c0_80, %c0_81], %152 {strides = array<i32>} : memref<8x512xf32, #tpu.memory_space<vmem>>, vector<8x512xf32>,
    return
  }
  func.func @transform_0(%arg0: i32) -> (i32, i32) {
    %c0_i32 = arith.constant 0 : i32
    %c0_i32_0 = arith.constant 0 : i32
    %c0_i32_1 = arith.constant 0 : i32
    return %c0_i32, %c0_i32_0 : i32, i32
  }
  func.func @transform_1(%arg0: i32) -> (i32, i32) {
    %c0_i32 = arith.constant 0 : i32
    %c0_i32_0 = arith.constant 0 : i32
    return %c0_i32, %arg0 : i32, i32
  }
  func.func @transform_2(%arg0: i32) -> (i32, i32, i32) {
    %c0_i32 = arith.constant 0 : i32
    %c0_i32_0 = arith.constant 0 : i32
    %c0_i32_1 = arith.constant 0 : i32
    %c0_i32_2 = arith.constant 0 : i32
    return %c0_i32, %c0_i32_0, %c0_i32_1 : i32, i32, i32
  }
  func.func @transform_3(%arg0: i32) -> (i32, i32) {
    %c0_i32 = arith.constant 0 : i32
    %c0_i32_0 = arith.constant 0 : i32
    %c0_i32_1 = arith.constant 0 : i32
    return %c0_i32, %c0_i32_0 : i32, i32
  }
  func.func @transform_4(%arg0: i32) -> (i32, i32, i32) {
    %c0_i32 = arith.constant 0 : i32
    %c0_i32_0 = arith.constant 0 : i32
    %c0_i32_1 = arith.constant 0 : i32
    %c0_i32_2 = arith.constant 0 : i32
    return %c0_i32, %c0_i32_0, %c0_i32_1 : i32, i32, i32
  }
  func.func @transform_5(%arg0: i32) -> (i32, i32) {
    %c0_i32 = arith.constant 0 : i32
    %c0_i32_0 = arith.constant 0 : i32
    %c0_i32_1 = arith.constant 0 : i32
    return %c0_i32, %c0_i32_0 : i32, i32
  }
  func.func @transform_6(%arg0: i32) -> (i32, i32) {
    %c0_i32 = arith.constant 0 : i32
    %c0_i32_0 = arith.constant 0 : i32
    return %c0_i32, %arg0 : i32, i32
  }
}

</mosaic_0001>

<bundles_post_ra>
// kernel: tpu_custom_call.1
= control target key start
LH: loop header
LB: loop body
LE: loop exit
PB: predicated region body
PF: predicated region fallthrough
CT: control target
= control target key end

     0   :  { %11 = vsyncpa [#allocation3], 0  ;;  %s4275_s0 = inlined_call_operand.hbm [shape: f32[9,512], index: 0, kind: input, shape index: {}]   ;;  %s4276_s1 = inlined_call_operand.hbm [shape: f32[8,512], index: 1, kind: input, shape index: {}]   ;;  %s4277_s2 = inlined_call_operand.hbm [shape: f32[9,8,8], index: 2, kind: input, shape index: {}]   ;;  %s4278_s3 = inlined_call_operand.hbm [shape: f32[8,1], index: 3, kind: input, shape index: {}]   ;;  %s4279_s4 = inlined_call_operand.hbm [shape: f32[9,8,8], index: 4, kind: input, shape index: {}]   ;;  %s4280_s5 = inlined_call_operand.hbm [shape: f32[8,1], index: 5, kind: input, shape index: {}]   ;;  %s4281_s6 = inlined_call_operand.hbm [shape: f32[8,512], index: 6, kind: output, shape index: {}]  }
   0x1   :  { %12 = vsyncpa [#allocation6], 0 }
   0x2   :  { %13 = vsyncpa [#allocation9], 0 }
   0x3   :  { %14 = vsyncpa [#allocation12], 0 }
   0x4   :  { %15 = vsyncpa [#allocation4], 0  ;;  %s3579_s21 = smov [#allocation5]   ;;  %s3580_s23 = smov [#allocation8]  }
   0x5   :  { %s34_s22 = sshll.u32 %s3579_s21, 4  ;;  %s56_s24 = sshll.u32 %s3580_s23, 4  ;;  %s35_s22 = int_to_ptr.vmem [resolvable:$true] %s34_s22  ;;  %s57_s24 = int_to_ptr.vmem [resolvable:$true] %s56_s24 }
   0x6   :  { %s3415_s27 = scalar_lea.hbm %s4276_s1, 512 }
   0x7   :  { %p3416_p0 = scmp.ne.s32.totalorder %s4276_s1, %s3415_s27  ;;  %p3419_p1 = scmp.lt.u32.totalorder %s3415_s27, %s4276_s1 }
   0x9   :  { %p3421_p2 = pnand %p3419_p1, %p3416_p0 }
   0xb   :  { %3424 = shalt.err (!%p3421_p2)
}
   0xc   :  { %s3425_s8 = scalar_lea.vmem %s35_s22, 512  ;;  %p3430_p4 = scmp.lt.s32.totalorder %s35_s22, %s35_s22 }
   0xd   :  { %p3426_p3 = scmp.ne.s32.totalorder %s35_s22, %s3425_s8  ;;  %p3431_p5 = scmp.lt.s32.totalorder %s3425_s8, %s3425_s8 }
   0xf   :  { %p3432_p6 = por %p3431_p5, %p3430_p4 }
  0x11   :  { %p3433_p7 = pnand %p3432_p6, %p3426_p3 }
  0x13   :  { %3436 = shalt.err (!%p3433_p7)
}
  0x14   :  { %37 = dma.hbm_to_vmem [thread:$0]  %s4276_s1, 512, %s35_s22, [#allocation6]  }
  0x15   :  { %s3437_s13 = scalar_lea.hbm %s4278_s3, 128 }
  0x16   :  { %p3438_p8 = scmp.ne.s32.totalorder %s4278_s3, %s3437_s13  ;;  %p3441_p9 = scmp.lt.u32.totalorder %s3437_s13, %s4278_s3 }
  0x18   :  { %p3443_p10 = pnand %p3441_p9, %p3438_p8 }
  0x1a   :  { %3446 = shalt.err (!%p3443_p10)
}
  0x1b   :  { %s3447_s18 = scalar_lea.vmem %s57_s24, 128  ;;  %p3452_p12 = scmp.lt.s32.totalorder %s57_s24, %s57_s24 }
  0x1c   :  { %p3448_p11 = scmp.ne.s32.totalorder %s57_s24, %s3447_s18  ;;  %p3453_p13 = scmp.lt.s32.totalorder %s3447_s18, %s3447_s18 }
  0x1e   :  { %p3454_p0 = por %p3453_p13, %p3452_p12 }
  0x20   :  { %p3455_p1 = pnand %p3454_p0, %p3448_p11 }
  0x22   :  { %3458 = shalt.err (!%p3455_p1)
}
  0x23   :  { %59 = dma.hbm_to_vmem [thread:$0]  %s4278_s3, 128, %s57_s24, [#allocation9]  }
  0x24   :  { %s3581_s20 = smov [#allocation2]   ;;  %s3459_s25 = scalar_lea.hbm %s4275_s0, 1024 }
  0x25   :  { %s21_s21 = sshll.u32 %s3581_s20, 4  ;;  %p3460_p2 = scmp.ne.s32.totalorder %s4275_s0, %s3459_s25  ;;  %s22_s21 = int_to_ptr.vmem [resolvable:$true] %s21_s21 }
  0x26   :  { %p3463_p3 = scmp.lt.u32.totalorder %s3459_s25, %s4275_s0 }
  0x28   :  { %p3465_p4 = pnand %p3463_p3, %p3460_p2 }
  0x2a   :  { %3468 = shalt.err (!%p3465_p4)
}
  0x2b   :  { %s3469_s30 = scalar_lea.vmem %s22_s21, 1024  ;;  %p3474_p6 = scmp.lt.s32.totalorder %s22_s21, %s22_s21 }
  0x2c   :  { %p3470_p5 = scmp.ne.s32.totalorder %s22_s21, %s3469_s30  ;;  %p3475_p7 = scmp.lt.s32.totalorder %s3469_s30, %s3469_s30 }
  0x2e   :  { %p3476_p8 = por %p3475_p7, %p3474_p6 }
  0x30   :  { %p3477_p9 = pnand %p3476_p8, %p3470_p5 }
  0x32   :  { %3480 = shalt.err (!%p3477_p9)
}
  0x33   :  { %s3582_s3 = smov 512   ;;  %s3583_s24 = smov 32  }
  0x34   :  { %27 = dma.hbm_to_vmem [thread:$0]  %s4275_s0, 1024, %s22_s21, [#allocation3], %s3582_s3, %s3582_s3, %s3583_s24  }
  0x35   :  { %s3584_s9 = smov [#allocation7]   ;;  %s3481_s13 = scalar_lea.hbm %s4277_s2, 1152 }
  0x36   :  { %s43_s10 = sshll.u32 %s3584_s9, 4  ;;  %p3482_p10 = scmp.ne.s32.totalorder %s4277_s2, %s3481_s13  ;;  %s44_s10 = int_to_ptr.vmem [resolvable:$true] %s43_s10 }
  0x37   :  { %p3485_p11 = scmp.lt.u32.totalorder %s3481_s13, %s4277_s2 }
  0x39   :  { %p3487_p12 = pnand %p3485_p11, %p3482_p10 }
  0x3b   :  { %3490 = shalt.err (!%p3487_p12)
}
  0x3c   :  { %s3491_s18 = scalar_lea.vmem %s44_s10, 1152  ;;  %p3496_p0 = scmp.lt.s32.totalorder %s44_s10, %s44_s10 }
  0x3d   :  { %p3492_p13 = scmp.ne.s32.totalorder %s44_s10, %s3491_s18  ;;  %p3497_p1 = scmp.lt.s32.totalorder %s3491_s18, %s3491_s18 }
  0x3f   :  { %p3498_p2 = por %p3497_p1, %p3496_p0 }
  0x41   :  { %p3499_p3 = pnand %p3498_p2, %p3492_p13 }
  0x43   :  { %3502 = shalt.err (!%p3499_p3)
}
  0x44   :  { %s3585_s0 = smov 128   ;;  %s3586_s1 = smov 8  }
  0x45   :  { %49 = dma.hbm_to_vmem [thread:$0]  %s4277_s2, 1152, %s44_s10, [#allocation6], %s3585_s0, %s3585_s0, %s3586_s1  }
  0x46   :  { %s3587_s21 = smov [#allocation10]   ;;  %s3588_s23 = smov [#allocation11]  }
  0x47   :  { %s65_s22 = sshll.u32 %s3587_s21, 4  ;;  %s78_s25 = sshll.u32 %s3588_s23, 4  ;;  %s66_s22 = int_to_ptr.vmem [resolvable:$true] %s65_s22  ;;  %s79_s25 = int_to_ptr.vmem [resolvable:$true] %s78_s25 }
  0x48   :  { %s3503_s28 = scalar_lea.hbm %s4279_s4, 1152 }
  0x49   :  { %p3504_p4 = scmp.ne.s32.totalorder %s4279_s4, %s3503_s28  ;;  %p3507_p5 = scmp.lt.u32.totalorder %s3503_s28, %s4279_s4 }
  0x4b   :  { %p3509_p6 = pnand %p3507_p5, %p3504_p4 }
  0x4d   :  { %3512 = shalt.err (!%p3509_p6)
}
  0x4e   :  { %s3513_s2 = scalar_lea.vmem %s66_s22, 1152  ;;  %p3518_p8 = scmp.lt.s32.totalorder %s66_s22, %s66_s22 }
  0x4f   :  { %p3514_p7 = scmp.ne.s32.totalorder %s66_s22, %s3513_s2  ;;  %p3519_p9 = scmp.lt.s32.totalorder %s3513_s2, %s3513_s2 }
  0x51   :  { %p3520_p10 = por %p3519_p9, %p3518_p8 }
  0x53   :  { %p3521_p11 = pnand %p3520_p10, %p3514_p7 }
  0x55   :  { %3524 = shalt.err (!%p3521_p11)
}
  0x56   :  { %71 = dma.hbm_to_vmem [thread:$0]  %s4279_s4, 1152, %s66_s22, [#allocation9], %s3585_s0, %s3585_s0, %s3586_s1  }
  0x57   :  { %s3525_s11 = scalar_lea.hbm %s4280_s5, 128 }
  0x58   :  { %p3526_p12 = scmp.ne.s32.totalorder %s4280_s5, %s3525_s11  ;;  %p3529_p13 = scmp.lt.u32.totalorder %s3525_s11, %s4280_s5 }
  0x5a   :  { %p3531_p0 = pnand %p3529_p13, %p3526_p12 }
  0x5c   :  { %3534 = shalt.err (!%p3531_p0)
}
  0x5d   :  { %s3535_s16 = scalar_lea.vmem %s79_s25, 128  ;;  %p3540_p2 = scmp.lt.s32.totalorder %s79_s25, %s79_s25 }
  0x5e   :  { %p3536_p1 = scmp.ne.s32.totalorder %s79_s25, %s3535_s16  ;;  %p3541_p3 = scmp.lt.s32.totalorder %s3535_s16, %s3535_s16 }
  0x60   :  { %p3542_p4 = por %p3541_p3, %p3540_p2 }
  0x62   :  { %p3543_p5 = pnand %p3542_p4, %p3536_p1 }
  0x64   :  { %3546 = shalt.err (!%p3543_p5)
}
  0x65   :  { %81 = dma.hbm_to_vmem [thread:$0]  %s4280_s5, 128, %s79_s25, [#allocation12]  }
  0x66   :  { %3569 = dma.done.wait [#allocation3], 1024  }
  0x67   :  { %3570 = vsyncadd [#allocation3], 4294966272 }
  0x68   :  { %3571 = dma.done.wait [#allocation6], 1664  }
  0x69   :  { %3572 = vsyncadd [#allocation6], 4294965632 }
  0x6a   :  { %3573 = dma.done.wait [#allocation9], 1280  }
  0x6b   :  { %3574 = vsyncadd [#allocation9], 4294966016 }
  0x6c   :  { %3575 = dma.done.wait [#allocation12], 128  }
  0x6d   :  { %3576 = vsyncadd [#allocation12], 4294967168  ;;  %v3589_v0 = vmov 0.0   ;;  %v3709_v1 = vld [vmem:[#allocation5 + $0x10] sm:$0xff]  ;;  %v3711_v2 = vld [vmem:[#allocation5] sm:$0xff]  ;;  %s3590_s18 = smov 16   ;;  %v120_v7 = vlaneseq }
  0x6e   :  { %251 = vmatprep.mubr.f32.mxu0 %v3589_v0  ;;  %322 = vmatprep.mubr.f32.mxu1 %v3589_v0  ;;  %v3717_v3 = vld [vmem:[#allocation5 + $0x18] sm:$0xff]  ;;  %v3719_v4 = vld [vmem:[#allocation5 + $0x8] sm:$0xff]  ;;  %s3591_s5 = smov 17   ;;  %s3592_s0 = smov 15   ;;  %v3598_v5 = vmov 0   ;;  %v3790_v13 = vld [vmem:[#allocation2] sm:$0xff] }
  0x6f   :  { %152 = vrot.lane.b32.xlu1 %v3709_v1, %s3590_s18  ;;  %148 = vrot.lane.b32.xlu0 %v3711_v2, %s3590_s18  ;;  %s3593_s1 = smov 1   ;;  %s3594_s19 = smov 127   ;;  %v1749_v6 = vld [vmem:[#allocation8] sm:$0xff]  ;;  %v3781_v8 = vshrl.u32 %v120_v7, 7  ;;  %v3783_v9 = vand.u32 127, %v120_v7  ;;  %v3785_v10 = vld [vmem:[#allocation2 + $0x18] sm:$0xff] }
  0x70   :  { %s3595_s20 = smov 113   ;;  %s3596_s21 = smov 112   ;;  %3410 = vset.pattern.permute.xlu0 %v3598_v5  ;;  %v3788_v12 = vld [vmem:[#allocation2 + $0x8] sm:$0xff]  ;;  %v3792_v14 = vld [vmem:[#allocation2 + $0x10] sm:$0xff]  ;;  %vm183_vm2 = vcmask 64512   ;;  %v147_v51 = vld [vmem:[#allocation7] sm:$0xff] }
  0x71   :  { %s3597_s22 = smov 111   ;;  %v163_v11 = vsub.s32 1, %v3781_v8  ;;  %v129_v17 = vsub.s32 0, %v3781_v8  ;;  %vm156_vm0 = vcmp.lt.s32.totalorder %v3783_v9, 16  ;;  %vm122_vm1 = vcmp.lt.s32.totalorder %v3783_v9, 17  ;;  %v182_v33 = vld [vmem:[#allocation7 + $0x8] sm:$0xff] }
  0x72   :  { %v489_v41 = vsub.s32 2, %v3781_v8  ;;  %vm482_vm3 = vcmp.lt.s32.totalorder %v3783_v9, 15  ;;  %v673_v59 = vsub.s32 3, %v3781_v8  ;;  %vm666_vm4 = vcmp.lt.s32.totalorder %v3783_v9, 1  ;;  %s3599_s23 = smov [#allocation13]  }
  0x73   :  { %154 = vrot.lane.b32.xlu1 %v3717_v3, %s3590_s18  ;;  %150 = vrot.lane.b32.xlu0 %v3719_v4, %s3590_s18  ;;  %v3797_v18 = vrot.slane %v3785_v10, %v163_v11  ;;  %v3800_v19 = vrot.slane %v3788_v12, %v163_v11  ;;  %v3803_v20 = vrot.slane %v3790_v13, %v163_v11  ;;  %vm1021_vm5 = vcmp.lt.s32.totalorder %v3783_v9, 127  ;;  %s3273_s25 = sshll.u32 %s3599_s23, 4  ;;  %s3274_s25 = int_to_ptr.vmem [resolvable:$true] %s3273_s25 }
  0x74   :  { %v3806_v21 = vrot.slane %v3792_v14, %v163_v11  ;;  %v3810_v24 = vrot.slane %v3788_v12, %v129_v17  ;;  %v3827_v37 = vrot.slane %v3785_v10, %v129_v17  ;;  %v3833_v39 = vrot.slane %v3790_v13, %v129_v17  ;;  %s3547_s26 = scalar_lea.vmem %s3274_s25, 512  ;;  %p3552_p7 = scmp.lt.s32.totalorder %s3274_s25, %s3274_s25 }
  0x75   :  { %v3836_v40 = vrot.slane %v3792_v14, %v129_v17  ;;  %v3852_v50 = vrot.slane %v3788_v12, %v489_v41  ;;  %v3857_v55 = vrot.slane %v3790_v13, %v489_v41  ;;  %v3863_v57 = vrot.slane %v3792_v14, %v489_v41  ;;  %v508_v17 = vld [vmem:[#allocation7 + $0x10] sm:$0xff]  ;;  %p3548_p6 = scmp.ne.s32.totalorder %s3274_s25, %s3547_s26  ;;  %p3553_p8 = scmp.lt.s32.totalorder %s3547_s26, %s3547_s26 }
  0x76   :  { %v3866_v58 = vrot.slane %v3785_v10, %v489_v41  ;;  %vm1205_vm6 = vcmp.lt.s32.totalorder %v3783_v9, 113  ;;  %vm1389_vm7 = vcmp.lt.s32.totalorder %v3783_v9, 112  ;;  %vm1573_vm8 = vcmp.lt.s32.totalorder %v3783_v9, 111  ;;  %v3095_v9 = vld [vmem:[#allocation10 + $0x40] sm:$0xff] }
  0x77   :  { %114 = vrot.lane.b32.xlu1 %v3719_v4, %s3591_s5  ;;  %112 = vrot.lane.b32.xlu0 %v3711_v2, %s3591_s5  ;;  %p3554_p9 = por %p3553_p8, %p3552_p7 }
  0x79   :  { %p3555_p10 = pnand %p3554_p9, %p3548_p6 }
  0x7b   :  { %118 = vrot.lane.b32.xlu1 %v3717_v3, %s3591_s5  ;;  %116 = vrot.lane.b32.xlu0 %v3709_v1, %s3591_s5 }
  0x7f   :  { %476 = vrot.lane.b32.xlu1 %v3719_v4, %s3592_s0  ;;  %474 = vrot.lane.b32.xlu0 %v3711_v2, %s3592_s0 }
  0x83   :  { %480 = vrot.lane.b32.xlu1 %v3717_v3, %s3592_s0  ;;  %478 = vrot.lane.b32.xlu0 %v3709_v1, %s3592_s0 }
  0x87   :  { %660 = vrot.lane.b32.xlu1 %v3719_v4, %s3593_s1  ;;  %658 = vrot.lane.b32.xlu0 %v3711_v2, %s3593_s1 }
  0x8b   :  { %664 = vrot.lane.b32.xlu1 %v3717_v3, %s3593_s1  ;;  %662 = vrot.lane.b32.xlu0 %v3709_v1, %s3593_s1 }
  0x8f   :  { %1013 = vrot.lane.b32.xlu0 %v3711_v2, %s3594_s19  ;;  %1015 = vrot.lane.b32.xlu1 %v3719_v4, %s3594_s19 }
  0x93   :  { %1017 = vrot.lane.b32.xlu0 %v3709_v1, %s3594_s19  ;;  %1019 = vrot.lane.b32.xlu1 %v3717_v3, %s3594_s19 }
  0x97   :  { %1197 = vrot.lane.b32.xlu0 %v3711_v2, %s3595_s20  ;;  %1199 = vrot.lane.b32.xlu1 %v3719_v4, %s3595_s20 }
  0x9b   :  { %1201 = vrot.lane.b32.xlu0 %v3709_v1, %s3595_s20  ;;  %1203 = vrot.lane.b32.xlu1 %v3717_v3, %s3595_s20 }
  0x9f   :  { %1381 = vrot.lane.b32.xlu0 %v3711_v2, %s3596_s21  ;;  %1383 = vrot.lane.b32.xlu1 %v3719_v4, %s3596_s21 }
  0xa3   :  { %1385 = vrot.lane.b32.xlu0 %v3709_v1, %s3596_s21  ;;  %1387 = vrot.lane.b32.xlu1 %v3717_v3, %s3596_s21 }
  0xa7   :  { %1565 = vrot.lane.b32.xlu0 %v3711_v2, %s3597_s22  ;;  %1567 = vrot.lane.b32.xlu1 %v3719_v4, %s3597_s22 }
  0xab   :  { %1569 = vrot.lane.b32.xlu0 %v3709_v1, %s3597_s22  ;;  %1571 = vrot.lane.b32.xlu1 %v3717_v3, %s3597_s22 }
  0xaf   :  { %1752 = vperm.xlu0 %3410, %v1749_v6   ;;  %v844_v6 = vsub.s32 4, %v3781_v8 }
  0xe1   :  { %v153_v15 = vpop.permute.xlu1 %152  ;;  %v149_v16 = vpop.permute.xlu0 %148 }
  0xe5   :  { %v155_v22 = vpop.permute.xlu1 %154  ;;  %v151_v23 = vpop.permute.xlu0 %150 }
  0xe6   :  { %v160_v25 = vsel %vm156_vm0, %v155_v22, %v149_v16  ;;  %v158_v26 = vsel %vm156_vm0, %v151_v23, %v153_v15  ;;  %v157_v27 = vsel %vm156_vm0, %v153_v15, %v155_v22  ;;  %v159_v28 = vsel %vm156_vm0, %v149_v16, %v151_v23 }
  0xe7   :  { %v180_v29 = vmul.f32 %v3797_v18, %v157_v27  ;;  %v178_v30 = vmul.f32 %v3800_v19, %v159_v28  ;;  %v177_v31 = vmul.f32 %v3803_v20, %v160_v25  ;;  %v179_v32 = vmul.f32 %v3806_v21, %v158_v26 }
  0xe8   :  { %v3883_v16 = vrot.slane %v3788_v12, %v673_v59  ;;  %v3888_v26 = vrot.slane %v3790_v13, %v673_v59  ;;  %v3891_v27 = vrot.slane %v3788_v12, %v844_v6 }
  0xe9   :  { %258 = vmatprep.subr.mxu1 %v180_v29  ;;  %v115_v34 = vpop.permute.xlu1 %114  ;;  %187 = vmatprep.subr.mxu0 %v178_v30  ;;  %v113_v35 = vpop.permute.xlu0 %112  ;;  %v3897_v29 = vrot.slane %v3792_v14, %v673_v59  ;;  %v3900_v30 = vrot.slane %v3785_v10, %v673_v59 }
  0xea   :  { %v125_v36 = vsel %vm122_vm1, %v113_v35, %v115_v34  ;;  %188 = vmatpush1.msra.mxu0 %v177_v31  ;;  %259 = vmatpush1.msra.mxu1 %v179_v32  ;;  %v3905_v31 = vrot.slane %v3785_v10, %v844_v6  ;;  %v3908_v32 = vrot.slane %v3790_v13, %v844_v6 }
  0xeb   :  { %v144_v38 = vmul.f32 %v3810_v24, %v125_v36  ;;  %3285 = vmatmul.mubr.msk.f32.vlgmr.msra.gmra.mrb[0].mxu0 %vm183_vm2, %v182_v33  ;;  %3286 = vmatmul.mubr.msk.f32.vlgmr.msra.gmra.mrb[0].mxu1 %vm183_vm2, %v182_v33 }
  0xec   :  { %396 = vmatprep.mubr.f32.mxu0 %v3589_v0  ;;  %467 = vmatprep.mubr.f32.mxu1 %v3589_v0 }
  0xed   :  { %v119_v42 = vpop.permute.xlu1 %118  ;;  %v117_v43 = vpop.permute.xlu0 %116  ;;  %332 = vmatprep.subr.mxu0 %v144_v38 }
  0xee   :  { %v126_v44 = vsel %vm122_vm1, %v119_v42, %v113_v35  ;;  %v123_v45 = vsel %vm122_vm1, %v117_v43, %v119_v42  ;;  %v124_v46 = vsel %vm122_vm1, %v115_v34, %v117_v43  ;;  %v3911_v35 = vrot.slane %v3792_v14, %v844_v6 }
  0xef   :  { %v143_v47 = vmul.f32 %v3833_v39, %v126_v44  ;;  %v145_v48 = vmul.f32 %v3836_v40, %v124_v46  ;;  %v146_v49 = vmul.f32 %v3827_v37, %v123_v45  ;;  %v859_v42 = vmul.f32 %v3891_v27, %v3719_v4 }
  0xf0   :  { %v1028_v46 = vsub.s32 5, %v3781_v8  ;;  %v860_v4 = vmul.f32 %v3911_v35, %v3709_v1  ;;  %v1212_v6 = vsub.s32 6, %v3781_v8 }
  0xf1   :  { %v477_v52 = vpop.permute.xlu1 %476  ;;  %333 = vmatpush1.msra.mxu0 %v143_v47  ;;  %403 = vmatprep.subr.mxu1 %v146_v49  ;;  %v475_v53 = vpop.permute.xlu0 %474  ;;  %v692_v47 = vld [vmem:[#allocation7 + $0x18] sm:$0xff]  ;;  %v858_v49 = vmul.f32 %v3908_v32, %v3711_v2 }
  0xf2   :  { %v485_v54 = vsel %vm482_vm3, %v475_v53, %v477_v52  ;;  %404 = vmatpush1.msra.mxu1 %v145_v48  ;;  %v861_v48 = vmul.f32 %v3905_v31, %v3717_v3  ;;  %v3935_v3 = vrot.slane %v3788_v12, %v1028_v46  ;;  %v3938_v2 = vrot.slane %v3785_v10, %v1028_v46 }
  0xf3   :  { %v504_v56 = vmul.f32 %v3852_v50, %v485_v54  ;;  %3287 = vmatmul.mubr.msk.f32.vlgmr.msra.gmra.mrb[0].mxu0 %vm183_vm2, %v147_v51  ;;  %3288 = vmatmul.mubr.msk.f32.vlgmr.msra.gmra.mrb[0].mxu1 %vm183_vm2, %v147_v51  ;;  %v3944_v54 = vrot.slane %v3792_v14, %v1028_v46 }
  0xf4   :  { %576 = vmatprep.mubr.f32.mxu0 %v3589_v0  ;;  %647 = vmatprep.mubr.f32.mxu1 %v3589_v0 }
  0xf5   :  { %v481_v60 = vpop.permute.xlu1 %480  ;;  %v479_v61 = vpop.permute.xlu0 %478  ;;  %512 = vmatprep.subr.mxu0 %v504_v56 }
  0xf6   :  { %v486_v62 = vsel %vm482_vm3, %v481_v60, %v475_v53  ;;  %v483_v63 = vsel %vm482_vm3, %v479_v61, %v481_v60  ;;  %v484_v5 = vsel %vm482_vm3, %v477_v52, %v479_v61  ;;  %v3941_v53 = vrot.slane %v3790_v13, %v1028_v46 }
  0xf7   :  { %v503_v7 = vmul.f32 %v3857_v55, %v486_v62  ;;  %v505_v11 = vmul.f32 %v3863_v57, %v484_v5  ;;  %v506_v15 = vmul.f32 %v3866_v58, %v483_v63  ;;  %v1396_v46 = vsub.s32 7, %v3781_v8 }
  0xf9   :  { %v661_v22 = vpop.permute.xlu1 %660  ;;  %513 = vmatpush1.msra.mxu0 %v503_v7  ;;  %583 = vmatprep.subr.mxu1 %v506_v15  ;;  %v659_v23 = vpop.permute.xlu0 %658  ;;  %v863_v15 = vld [vmem:[#allocation7 + $0x20] sm:$0xff]  ;;  %v3998_v8 = vrot.slane %v3785_v10, %v1396_v46 }
  0xfa   :  { %v669_v25 = vsel %vm666_vm4, %v659_v23, %v661_v22  ;;  %584 = vmatpush1.msra.mxu1 %v505_v11 }
  0xfb   :  { %v688_v28 = vmul.f32 %v3883_v16, %v669_v25  ;;  %3289 = vmatmul.mubr.msk.f32.vlgmr.msra.gmra.mrb[0].mxu0 %vm183_vm2, %v508_v17  ;;  %3290 = vmatmul.mubr.msk.f32.vlgmr.msra.gmra.mrb[0].mxu1 %vm183_vm2, %v508_v17  ;;  %v3968_v25 = vrot.slane %v3785_v10, %v1212_v6 }
  0xfc   :  { %760 = vmatprep.mubr.f32.mxu0 %v3589_v0  ;;  %831 = vmatprep.mubr.f32.mxu1 %v3589_v0 }
  0xfd   :  { %v665_v33 = vpop.permute.xlu1 %664  ;;  %v663_v34 = vpop.permute.xlu0 %662  ;;  %696 = vmatprep.subr.mxu0 %v688_v28  ;;  %v3971_v28 = vrot.slane %v3790_v13, %v1212_v6 }
  0xfe   :  { %v670_v36 = vsel %vm666_vm4, %v665_v33, %v659_v23  ;;  %v667_v38 = vsel %vm666_vm4, %v663_v34, %v665_v33  ;;  %v668_v41 = vsel %vm666_vm4, %v661_v22, %v663_v34  ;;  %v3965_v23 = vrot.slane %v3788_v12, %v1212_v6 }
  0xff   :  { %v687_v43 = vmul.f32 %v3888_v26, %v670_v36  ;;  %v689_v44 = vmul.f32 %v3897_v29, %v668_v41  ;;  %v690_v45 = vmul.f32 %v3900_v30, %v667_v38  ;;  %v3974_v33 = vrot.slane %v3792_v14, %v1212_v6  ;;  %v1231_v6 = vld [vmem:[#allocation7 + $0x30] sm:$0xff] }
 0x101   :  { %697 = vmatpush1.msra.mxu0 %v687_v43  ;;  %767 = vmatprep.subr.mxu1 %v690_v45  ;;  %v1014_v51 = vpop.permute.xlu0 %1013  ;;  %v1016_v52 = vpop.permute.xlu1 %1015 }
 0x102   :  { %768 = vmatpush1.msra.mxu1 %v689_v44  ;;  %867 = vmatprep.subr.mxu0 %v859_v42  ;;  %v1024_v1 = vsel %vm1021_vm5, %v1014_v51, %v1016_v52 }
 0x103   :  { %3291 = vmatmul.mubr.msk.f32.vlgmr.msra.gmra.mrb[0].mxu0 %vm183_vm2, %v692_v47  ;;  %3292 = vmatmul.mubr.msk.f32.vlgmr.msra.gmra.mrb[0].mxu1 %vm183_vm2, %v692_v47  ;;  %v1042_v7 = vmul.f32 %v3941_v53, %v1024_v1  ;;  %v4001_v1 = vrot.slane %v3790_v13, %v1396_v46 }
 0x104   :  { %938 = vmatprep.subr.mxu1 %v861_v48  ;;  %868 = vmatpush1.msra.mxu0 %v858_v49  ;;  %v1047_v49 = vld [vmem:[#allocation7 + $0x28] sm:$0xff] }
 0x105   :  { %v1018_v56 = vpop.permute.xlu0 %1017  ;;  %v1020_v59 = vpop.permute.xlu1 %1019  ;;  %931 = vmatprep.mubr.f32.mxu0 %v3589_v0  ;;  %939 = vmatpush1.msra.mxu1 %v860_v4  ;;  %v3995_v4 = vrot.slane %v3788_v12, %v1396_v46 }
 0x106   :  { %v1023_v60 = vsel %vm1021_vm5, %v1016_v52, %v1018_v56  ;;  %v1022_v61 = vsel %vm1021_vm5, %v1018_v56, %v1020_v59  ;;  %v1025_v62 = vsel %vm1021_vm5, %v1020_v59, %v1014_v51  ;;  %1002 = vmatprep.mubr.f32.mxu1 %v3589_v0  ;;  %v4004_v56 = vrot.slane %v3792_v14, %v1396_v46 }
 0x107   :  { %v1043_v63 = vmul.f32 %v3935_v3, %v1023_v60  ;;  %v1045_v5 = vmul.f32 %v3938_v2, %v1025_v62  ;;  %v1044_v11 = vmul.f32 %v3944_v54, %v1022_v61 }
 0x109   :  { %v1198_v17 = vpop.permute.xlu0 %1197  ;;  %1051 = vmatprep.subr.mxu0 %v1043_v63  ;;  %v1200_v22 = vpop.permute.xlu1 %1199  ;;  %1122 = vmatprep.subr.mxu1 %v1045_v5 }
 0x10a   :  { %v1208_v34 = vsel %vm1205_vm6, %v1198_v17, %v1200_v22 }
 0x10b   :  { %3293 = vmatmul.mubr.msk.f32.vlgmr.msra.gmra.mrb[0].mxu0 %vm183_vm2, %v863_v15  ;;  %3294 = vmatmul.mubr.msk.f32.vlgmr.msra.gmra.mrb[0].mxu1 %vm183_vm2, %v863_v15  ;;  %v1226_v47 = vmul.f32 %v3971_v28, %v1208_v34  ;;  %v4023_v15 = vld [vmem:[#allocation2 + $0x28] ss:$0 sm:$0xff] }
 0x10c   :  { %1052 = vmatpush1.msra.mxu0 %v1042_v7  ;;  %1123 = vmatpush1.msra.mxu1 %v1044_v11 }
 0x10d   :  { %v1202_v36 = vpop.permute.xlu0 %1201  ;;  %v1204_v38 = vpop.permute.xlu1 %1203  ;;  %1115 = vmatprep.mubr.f32.mxu0 %v3589_v0  ;;  %1186 = vmatprep.mubr.f32.mxu1 %v3589_v0 }
 0x10e   :  { %v1207_v41 = vsel %vm1205_vm6, %v1200_v22, %v1202_v36  ;;  %v1206_v42 = vsel %vm1205_vm6, %v1202_v36, %v1204_v38  ;;  %v1209_v43 = vsel %vm1205_vm6, %v1204_v38, %v1198_v17  ;;  %v4025_v17 = vld [vmem:[#allocation2 + $0x38] ss:$0 sm:$0xff]  ;;  %v4027_v22 = vld [vmem:[#allocation2 + $0x20] ss:$0 sm:$0xff]  ;;  %v4031_v38 = vld [vmem:[#allocation2 + $0x30] ss:$0 sm:$0xff] }
 0x10f   :  { %v1227_v44 = vmul.f32 %v3965_v23, %v1207_v41  ;;  %v1229_v45 = vmul.f32 %v3968_v25, %v1209_v43  ;;  %v1228_v48 = vmul.f32 %v3974_v33, %v1206_v42 }
 0x111   :  { %v1382_v51 = vpop.permute.xlu0 %1381  ;;  %1235 = vmatprep.subr.mxu0 %v1227_v44  ;;  %v1384_v52 = vpop.permute.xlu1 %1383  ;;  %1306 = vmatprep.subr.mxu1 %v1229_v45 }
 0x112   :  { %v1392_v59 = vsel %vm1389_vm7, %v1382_v51, %v1384_v52 }
 0x113   :  { %3295 = vmatmul.mubr.msk.f32.vlgmr.msra.gmra.mrb[0].mxu0 %vm183_vm2, %v1047_v49  ;;  %3296 = vmatmul.mubr.msk.f32.vlgmr.msra.gmra.mrb[0].mxu1 %vm183_vm2, %v1047_v49  ;;  %v1410_v63 = vmul.f32 %v4001_v1, %v1392_v59  ;;  %v1415_v49 = vld [vmem:[#allocation7 + $0x38] sm:$0xff] }
 0x114   :  { %1236 = vmatpush1.msra.mxu0 %v1226_v47  ;;  %1307 = vmatpush1.msra.mxu1 %v1228_v48 }
 0x115   :  { %v1386_v60 = vpop.permute.xlu0 %1385  ;;  %v1388_v61 = vpop.permute.xlu1 %1387  ;;  %1299 = vmatprep.mubr.f32.mxu0 %v3589_v0  ;;  %1370 = vmatprep.mubr.f32.mxu1 %v3589_v0 }
 0x116   :  { %v1391_v10 = vsel %vm1389_vm7, %v1384_v52, %v1386_v60  ;;  %v1390_v12 = vsel %vm1389_vm7, %v1386_v60, %v1388_v61  ;;  %v1393_v13 = vsel %vm1389_vm7, %v1388_v61, %v1382_v51  ;;  %v1599_v51 = vld [vmem:[#allocation7 + $0x40] sm:$0xff] }
 0x117   :  { %v1411_v14 = vmul.f32 %v3995_v4, %v1391_v10  ;;  %v1413_v62 = vmul.f32 %v3998_v8, %v1393_v13  ;;  %v1412_v5 = vmul.f32 %v4004_v56, %v1390_v12 }
 0x119   :  { %v1566_v7 = vpop.permute.xlu0 %1565  ;;  %1419 = vmatprep.subr.mxu0 %v1411_v14  ;;  %v1568_v11 = vpop.permute.xlu1 %1567  ;;  %1490 = vmatprep.subr.mxu1 %v1413_v62 }
 0x11a   :  { %v1576_v34 = vsel %vm1573_vm8, %v1566_v7, %v1568_v11 }
 0x11b   :  { %3297 = vmatmul.mubr.msk.f32.vlgmr.msra.gmra.mrb[0].mxu0 %vm183_vm2, %v1231_v6  ;;  %3298 = vmatmul.mubr.msk.f32.vlgmr.msra.gmra.mrb[0].mxu1 %vm183_vm2, %v1231_v6  ;;  %v1594_v47 = vmul.f32 %v4027_v22, %v1576_v34 }
 0x11c   :  { %1420 = vmatpush1.msra.mxu0 %v1410_v63  ;;  %1491 = vmatpush1.msra.mxu1 %v1412_v5 }
 0x11d   :  { %v1570_v36 = vpop.permute.xlu0 %1569  ;;  %v1572_v41 = vpop.permute.xlu1 %1571  ;;  %1483 = vmatprep.mubr.f32.mxu0 %v3589_v0  ;;  %1554 = vmatprep.mubr.f32.mxu1 %v3589_v0 }
 0x11e   :  { %v1575_v42 = vsel %vm1573_vm8, %v1568_v11, %v1570_v36  ;;  %v1574_v43 = vsel %vm1573_vm8, %v1570_v36, %v1572_v41  ;;  %v1577_v44 = vsel %vm1573_vm8, %v1572_v41, %v1566_v7  ;;  %v3245_v11 = vld [vmem:[#allocation11] sm:$0xff] }
 0x11f   :  { %v1595_v45 = vmul.f32 %v4023_v15, %v1575_v42  ;;  %v1597_v46 = vmul.f32 %v4025_v17, %v1577_v44  ;;  %v1596_v48 = vmul.f32 %v4031_v38, %v1574_v43 }
 0x121   :  { %1603 = vmatprep.subr.mxu0 %v1595_v45  ;;  %1674 = vmatprep.subr.mxu1 %v1597_v46 }
 0x123   :  { %3299 = vmatmul.mubr.msk.f32.vlgmr.msra.gmra.mrb[0].mxu0 %vm183_vm2, %v1415_v49  ;;  %3300 = vmatmul.mubr.msk.f32.vlgmr.msra.gmra.mrb[0].mxu1 %vm183_vm2, %v1415_v49 }
 0x124   :  { %1604 = vmatpush1.msra.mxu0 %v1594_v47  ;;  %1675 = vmatpush1.msra.mxu1 %v1596_v48 }
 0x125   :  { %1667 = vmatprep.mubr.f32.mxu0 %v3589_v0  ;;  %1738 = vmatprep.mubr.f32.mxu1 %v3589_v0 }
 0x12b   :  { %3305 = vmatmul.mubr.msk.f32.vlgmr.msra.gmra.mrb[0].mxu0 %vm183_vm2, %v1599_v51  ;;  %3306 = vmatmul.mubr.msk.f32.vlgmr.msra.gmra.mrb[0].mxu1 %vm183_vm2, %v1599_v51 }
 0x12c   :  { %1865 = vmatprep.mubr.f32.mxu0 %v3589_v0  ;;  %1936 = vmatprep.mubr.f32.mxu1 %v3589_v0 }
 0x12e   :  { %v1753_v52 = vpop.permute.xlu0 %1752 }
 0x1fe   :  { %v1740_v59 = vpop.f32.mrb[0].mxu1  ;;  %v1669_v60 = vpop.f32.mrb[0].mxu0 }
 0x1ff   :  { %v1757_v61 = vadd.f32 %v1753_v52, %v1740_v59  ;;  %v1755_v10 = vadd.f32 %v1753_v52, %v1669_v60  ;;  %v1671_v12 = vpop.f32.mrb[1].mxu0  ;;  %v1742_v13 = vpop.f32.mrb[1].mxu1  ;;  %v1797_v59 = vld [vmem:[#allocation10 + $0x8] sm:$0xff] }
 0x200   :  { %v1756_v63 = vadd.f32 %v1753_v52, %v1671_v12  ;;  %v1758_v6 = vadd.f32 %v1753_v52, %v1742_v13 }
 0x201   :  { %v4053_v14 = vmax.f32 %v1757_v61, 0.0  ;;  %v4055_v62 = vmax.f32 %v1755_v10, 0.0 }
 0x202   :  { %v4061_v5 = vmax.f32 %v1756_v63, 0.0  ;;  %v4067_v7 = vmax.f32 %v1758_v6, 0.0 }
 0x203   :  { %1784 = vrot.lane.b32.xlu0 %v4053_v14, %s3590_s18  ;;  %1780 = vrot.lane.b32.xlu1 %v4055_v62, %s3590_s18 }
 0x207   :  { %1763 = vrot.lane.b32.xlu0 %v4055_v62, %s3591_s5  ;;  %1782 = vrot.lane.b32.xlu1 %v4061_v5, %s3590_s18 }
 0x20b   :  { %1767 = vrot.lane.b32.xlu0 %v4053_v14, %s3591_s5  ;;  %1786 = vrot.lane.b32.xlu1 %v4067_v7, %s3590_s18 }
 0x20f   :  { %2088 = vrot.lane.b32.xlu0 %v4055_v62, %s3592_s0  ;;  %1765 = vrot.lane.b32.xlu1 %v4061_v5, %s3591_s5 }
 0x213   :  { %2092 = vrot.lane.b32.xlu0 %v4053_v14, %s3592_s0  ;;  %1769 = vrot.lane.b32.xlu1 %v4067_v7, %s3591_s5 }
 0x217   :  { %2255 = vrot.lane.b32.xlu0 %v4055_v62, %s3593_s1  ;;  %2090 = vrot.lane.b32.xlu1 %v4061_v5, %s3592_s0 }
 0x21b   :  { %2259 = vrot.lane.b32.xlu0 %v4053_v14, %s3593_s1  ;;  %2094 = vrot.lane.b32.xlu1 %v4067_v7, %s3592_s0 }
 0x21f   :  { %2577 = vrot.lane.b32.xlu0 %v4055_v62, %s3594_s19  ;;  %2257 = vrot.lane.b32.xlu1 %v4061_v5, %s3593_s1 }
 0x223   :  { %2581 = vrot.lane.b32.xlu0 %v4053_v14, %s3594_s19  ;;  %2261 = vrot.lane.b32.xlu1 %v4067_v7, %s3593_s1 }
 0x227   :  { %2744 = vrot.lane.b32.xlu0 %v4055_v62, %s3595_s20  ;;  %2579 = vrot.lane.b32.xlu1 %v4061_v5, %s3594_s19 }
 0x22b   :  { %2748 = vrot.lane.b32.xlu0 %v4053_v14, %s3595_s20  ;;  %2583 = vrot.lane.b32.xlu1 %v4067_v7, %s3594_s19 }
 0x22f   :  { %2911 = vrot.lane.b32.xlu0 %v4055_v62, %s3596_s21  ;;  %2746 = vrot.lane.b32.xlu1 %v4061_v5, %s3595_s20 }
 0x233   :  { %2915 = vrot.lane.b32.xlu0 %v4053_v14, %s3596_s21  ;;  %2750 = vrot.lane.b32.xlu1 %v4067_v7, %s3595_s20 }
 0x237   :  { %3078 = vrot.lane.b32.xlu0 %v4055_v62, %s3597_s22  ;;  %2913 = vrot.lane.b32.xlu1 %v4061_v5, %s3596_s21 }
 0x23b   :  { %3082 = vrot.lane.b32.xlu0 %v4053_v14, %s3597_s22  ;;  %2917 = vrot.lane.b32.xlu1 %v4067_v7, %s3596_s21 }
 0x23f   :  { %3248 = vperm.xlu0 %3410, %v3245_v11   ;;  %3080 = vrot.lane.b32.xlu1 %v4061_v5, %s3597_s22  ;;  %v1779_v11 = vld [vmem:[#allocation10] sm:$0xff] }
 0x243   :  { %3084 = vrot.lane.b32.xlu1 %v4067_v7, %s3597_s22 }
 0x275   :  { %v1785_v34 = vpop.permute.xlu0 %1784  ;;  %v1781_v36 = vpop.permute.xlu1 %1780 }
 0x279   :  { %v1764_v41 = vpop.permute.xlu0 %1763  ;;  %v1783_v42 = vpop.permute.xlu1 %1782 }
 0x27a   :  { %v1790_v43 = vsel %vm156_vm0, %v1781_v36, %v1783_v42  ;;  %v1789_v45 = vsel %vm156_vm0, %v1783_v42, %v1785_v34 }
 0x27b   :  { %v1793_v44 = vmul.f32 %v1790_v43, %v3800_v19  ;;  %v1794_v60 = vmul.f32 %v1789_v45, %v3806_v21 }
 0x27d   :  { %v1768_v46 = vpop.permute.xlu0 %1767  ;;  %1801 = vmatprep.subr.mxu0 %v1793_v44  ;;  %v1787_v47 = vpop.permute.xlu1 %1786 }
 0x27e   :  { %v1788_v48 = vsel %vm156_vm0, %v1785_v34, %v1787_v47  ;;  %v1791_v49 = vsel %vm156_vm0, %v1787_v47, %v1781_v36  ;;  %v2105_v47 = vld [vmem:[#allocation10 + $0x10] sm:$0xff] }
 0x27f   :  { %v1792_v51 = vmul.f32 %v1791_v49, %v3803_v20  ;;  %v1795_v52 = vmul.f32 %v1788_v48, %v3797_v18 }
 0x281   :  { %v2089_v19 = vpop.permute.xlu0 %2088  ;;  %1802 = vmatpush1.msra.mxu0 %v1792_v51  ;;  %1872 = vmatprep.subr.mxu1 %v1795_v52  ;;  %v1766_v61 = vpop.permute.xlu1 %1765 }
 0x282   :  { %v1773_v10 = vsel %vm122_vm1, %v1764_v41, %v1766_v61  ;;  %3307 = vmatmul.mubr.msk.f32.vlgmr.msra.gmra.mrb[2].mxu0 %vm183_vm2, %v1797_v59  ;;  %1873 = vmatpush1.msra.mxu1 %v1794_v60  ;;  %v1772_v18 = vsel %vm122_vm1, %v1766_v61, %v1768_v46 }
 0x283   :  { %v1776_v12 = vmul.f32 %v1773_v10, %v3810_v24  ;;  %3308 = vmatmul.mubr.msk.f32.vlgmr.msra.gmra.mrb[2].mxu1 %vm183_vm2, %v1797_v59  ;;  %2010 = vmatprep.mubr.f32.mxu0 %v3589_v0  ;;  %v1777_v34 = vmul.f32 %v1772_v18, %v3836_v40  ;;  %v2272_v10 = vld [vmem:[#allocation10 + $0x18] sm:$0xff] }
 0x284   :  { %2081 = vmatprep.mubr.f32.mxu1 %v3589_v0 }
 0x285   :  { %v2093_v20 = vpop.permute.xlu0 %2092  ;;  %1946 = vmatprep.subr.mxu0 %v1776_v12  ;;  %v1770_v21 = vpop.permute.xlu1 %1769 }
 0x286   :  { %v1771_v13 = vsel %vm122_vm1, %v1768_v46, %v1770_v21  ;;  %v1774_v63 = vsel %vm122_vm1, %v1770_v21, %v1764_v41  ;;  %v2423_v21 = vmul.f32 %v4061_v5, %v3891_v27  ;;  %v2424_v27 = vmul.f32 %v4053_v14, %v3911_v35  ;;  %v2427_v14 = vld [vmem:[#allocation10 + $0x20] sm:$0xff] }
 0x287   :  { %v1775_v24 = vmul.f32 %v1774_v63, %v3833_v39  ;;  %v1778_v6 = vmul.f32 %v1771_v13, %v3827_v37 }
 0x289   :  { %v2256_v36 = vpop.permute.xlu0 %2255  ;;  %1947 = vmatpush1.msra.mxu0 %v1775_v24  ;;  %2017 = vmatprep.subr.mxu1 %v1778_v6  ;;  %v2091_v42 = vpop.permute.xlu1 %2090 }
 0x28a   :  { %v2098_v43 = vsel %vm482_vm3, %v2089_v19, %v2091_v42  ;;  %3309 = vmatmul.mubr.msk.f32.vlgmr.msra.gmra.mrb[2].mxu0 %vm183_vm2, %v1779_v11  ;;  %2018 = vmatpush1.msra.mxu1 %v1777_v34  ;;  %v2097_v37 = vsel %vm482_vm3, %v2091_v42, %v2093_v20 }
 0x28b   :  { %v2101_v44 = vmul.f32 %v2098_v43, %v3852_v50  ;;  %3310 = vmatmul.mubr.msk.f32.vlgmr.msra.gmra.mrb[2].mxu1 %vm183_vm2, %v1779_v11  ;;  %2173 = vmatprep.mubr.f32.mxu0 %v3589_v0  ;;  %v2102_v48 = vmul.f32 %v2097_v37, %v3863_v57  ;;  %v2594_v43 = vld [vmem:[#allocation10 + $0x28] sm:$0xff] }
 0x28c   :  { %2244 = vmatprep.mubr.f32.mxu1 %v3589_v0 }
 0x28d   :  { %v2260_v39 = vpop.permute.xlu0 %2259  ;;  %2109 = vmatprep.subr.mxu0 %v2101_v44  ;;  %v2095_v40 = vpop.permute.xlu1 %2094 }
 0x28e   :  { %v2096_v41 = vsel %vm482_vm3, %v2093_v20, %v2095_v40  ;;  %v2099_v45 = vsel %vm482_vm3, %v2095_v40, %v2089_v19 }
 0x28f   :  { %v2100_v50 = vmul.f32 %v2099_v45, %v3857_v55  ;;  %v2103_v46 = vmul.f32 %v2096_v41, %v3866_v58 }
 0x291   :  { %v2578_v49 = vpop.permute.xlu0 %2577  ;;  %2110 = vmatpush1.msra.mxu0 %v2100_v50  ;;  %2180 = vmatprep.subr.mxu1 %v2103_v46  ;;  %v2258_v51 = vpop.permute.xlu1 %2257  ;;  %v2761_v46 = vld [vmem:[#allocation10 + $0x30] sm:$0xff] }
 0x292   :  { %v2265_v52 = vsel %vm666_vm4, %v2256_v36, %v2258_v51  ;;  %3311 = vmatmul.mubr.msk.f32.vlgmr.msra.gmra.mrb[2].mxu0 %vm183_vm2, %v2105_v47  ;;  %2181 = vmatpush1.msra.mxu1 %v2102_v48  ;;  %v2264_v55 = vsel %vm666_vm4, %v2258_v51, %v2260_v39 }
 0x293   :  { %v2268_v59 = vmul.f32 %v2265_v52, %v3883_v16  ;;  %3312 = vmatmul.mubr.msk.f32.vlgmr.msra.gmra.mrb[2].mxu1 %vm183_vm2, %v2105_v47  ;;  %2340 = vmatprep.mubr.f32.mxu0 %v3589_v0  ;;  %v2269_v12 = vmul.f32 %v2264_v55, %v3897_v29 }
 0x294   :  { %2411 = vmatprep.mubr.f32.mxu1 %v3589_v0 }
 0x295   :  { %v2582_v57 = vpop.permute.xlu0 %2581  ;;  %2276 = vmatprep.subr.mxu0 %v2268_v59  ;;  %v2262_v58 = vpop.permute.xlu1 %2261 }
 0x296   :  { %v2263_v60 = vsel %vm666_vm4, %v2260_v39, %v2262_v58  ;;  %v2266_v19 = vsel %vm666_vm4, %v2262_v58, %v2256_v36 }
 0x297   :  { %v2267_v16 = vmul.f32 %v2266_v19, %v3888_v26  ;;  %v2270_v61 = vmul.f32 %v2263_v60, %v3900_v30  ;;  %v2422_v26 = vmul.f32 %v4055_v62, %v3908_v32  ;;  %v2425_v30 = vmul.f32 %v4067_v7, %v3905_v31 }
 0x299   :  { %v2745_v18 = vpop.permute.xlu0 %2744  ;;  %2277 = vmatpush1.msra.mxu0 %v2267_v16  ;;  %2347 = vmatprep.subr.mxu1 %v2270_v61  ;;  %v2580_v20 = vpop.permute.xlu1 %2579 }
 0x29a   :  { %v2586_v13 = vsel %vm1021_vm5, %v2580_v20, %v2582_v57  ;;  %3313 = vmatmul.mubr.msk.f32.vlgmr.msra.gmra.mrb[2].mxu0 %vm183_vm2, %v2272_v10  ;;  %2348 = vmatpush1.msra.mxu1 %v2269_v12  ;;  %v2587_v32 = vsel %vm1021_vm5, %v2578_v49, %v2580_v20 }
 0x29b   :  { %v2590_v29 = vmul.f32 %v2586_v13, %v3935_v3  ;;  %2431 = vmatprep.subr.mxu0 %v2423_v21  ;;  %3314 = vmatmul.mubr.msk.f32.vlgmr.msra.gmra.mrb[2].mxu1 %vm183_vm2, %v2272_v10  ;;  %v2589_v62 = vmul.f32 %v2587_v32, %v3941_v53  ;;  %v3412_v13 = vld [vmem:[#allocation5 + $0x8] sm:$0xff] }
 0x29c   :  { %2432 = vmatpush1.msra.mxu0 %v2422_v26  ;;  %2502 = vmatprep.subr.mxu1 %v2425_v30  ;;  %v3413_v30 = vld [vmem:[#allocation5 + $0x10] sm:$0xff] }
 0x29d   :  { %2503 = vmatpush1.msra.mxu1 %v2424_v27  ;;  %v2749_v5 = vpop.permute.xlu0 %2748  ;;  %v2584_v63 = vpop.permute.xlu1 %2583  ;;  %2598 = vmatprep.subr.mxu0 %v2590_v29  ;;  %v3414_v27 = vld [vmem:[#allocation5 + $0x18] sm:$0xff] }
 0x29e   :  { %v2588_v31 = vsel %vm1021_vm5, %v2584_v63, %v2578_v49  ;;  %2495 = vmatprep.mubr.f32.mxu0 %v3589_v0  ;;  %2566 = vmatprep.mubr.f32.mxu1 %v3589_v0  ;;  %v2585_v3 = vsel %vm1021_vm5, %v2582_v57, %v2584_v63  ;;  %v2928_v57 = vld [vmem:[#allocation10 + $0x38] sm:$0xff] }
 0x29f   :  { %v2592_v35 = vmul.f32 %v2588_v31, %v3938_v2  ;;  %v2591_v6 = vmul.f32 %v2585_v3, %v3944_v54 }
 0x2a1   :  { %v2912_v7 = vpop.permute.xlu0 %2911  ;;  %2669 = vmatprep.subr.mxu1 %v2592_v35  ;;  %v2747_v24 = vpop.permute.xlu1 %2746 }
 0x2a2   :  { %v2753_v11 = vsel %vm1205_vm6, %v2747_v24, %v2749_v5  ;;  %3315 = vmatmul.mubr.msk.f32.vlgmr.msra.gmra.mrb[2].mxu0 %vm183_vm2, %v2427_v14  ;;  %v2754_v54 = vsel %vm1205_vm6, %v2745_v18, %v2747_v24 }
 0x2a3   :  { %v2757_v34 = vmul.f32 %v2753_v11, %v3965_v23  ;;  %2599 = vmatpush1.msra.mxu0 %v2589_v62  ;;  %3316 = vmatmul.mubr.msk.f32.vlgmr.msra.gmra.mrb[2].mxu1 %vm183_vm2, %v2427_v14  ;;  %v2756_v44 = vmul.f32 %v2754_v54, %v3971_v28 }
 0x2a4   :  { %2670 = vmatpush1.msra.mxu1 %v2591_v6  ;;  %2662 = vmatprep.mubr.f32.mxu0 %v3589_v0 }
 0x2a5   :  { %v2916_v2 = vpop.permute.xlu0 %2915  ;;  %v2751_v53 = vpop.permute.xlu1 %2750  ;;  %2765 = vmatprep.subr.mxu0 %v2757_v34  ;;  %2733 = vmatprep.mubr.f32.mxu1 %v3589_v0 }
 0x2a6   :  { %v2755_v36 = vsel %vm1205_vm6, %v2751_v53, %v2745_v18  ;;  %v2752_v23 = vsel %vm1205_vm6, %v2749_v5, %v2751_v53  ;;  %v3411_v18 = vld [vmem:[#allocation5] sm:$0xff] }
 0x2a7   :  { %v2759_v42 = vmul.f32 %v2755_v36, %v3968_v25  ;;  %v2758_v39 = vmul.f32 %v2752_v23, %v3974_v33 }
 0x2a9   :  { %2836 = vmatprep.subr.mxu1 %v2759_v42  ;;  %v2914_v37 = vpop.permute.xlu1 %2913  ;;  %v3079_v41 = vpop.permute.xlu0 %3078 }
 0x2aa   :  { %v2920_v40 = vsel %vm1389_vm7, %v2914_v37, %v2916_v2  ;;  %3317 = vmatmul.mubr.msk.f32.vlgmr.msra.gmra.mrb[2].mxu0 %vm183_vm2, %v2594_v43  ;;  %v2921_v28 = vsel %vm1389_vm7, %v2912_v7, %v2914_v37 }
 0x2ab   :  { %v2924_v45 = vmul.f32 %v2920_v40, %v3995_v4  ;;  %2766 = vmatpush1.msra.mxu0 %v2756_v44  ;;  %3318 = vmatmul.mubr.msk.f32.vlgmr.msra.gmra.mrb[2].mxu1 %vm183_vm2, %v2594_v43  ;;  %v2923_v47 = vmul.f32 %v2921_v28, %v4001_v1 }
 0x2ac   :  { %2837 = vmatpush1.msra.mxu1 %v2758_v39  ;;  %2829 = vmatprep.mubr.f32.mxu0 %v3589_v0 }
 0x2ad   :  { %v2918_v25 = vpop.permute.xlu1 %2917  ;;  %2932 = vmatprep.subr.mxu0 %v2924_v45  ;;  %2900 = vmatprep.mubr.f32.mxu1 %v3589_v0  ;;  %v3083_v48 = vpop.permute.xlu0 %3082 }
 0x2ae   :  { %v2922_v33 = vsel %vm1389_vm7, %v2918_v25, %v2912_v7  ;;  %v2919_v50 = vsel %vm1389_vm7, %v2916_v2, %v2918_v25 }
 0x2af   :  { %v2926_v4 = vmul.f32 %v2922_v33, %v3998_v8  ;;  %v2925_v51 = vmul.f32 %v2919_v50, %v4004_v56 }
 0x2b1   :  { %3003 = vmatprep.subr.mxu1 %v2926_v4  ;;  %v3081_v49 = vpop.permute.xlu1 %3080 }
 0x2b2   :  { %v3087_v52 = vsel %vm1573_vm8, %v3081_v49, %v3083_v48  ;;  %3319 = vmatmul.mubr.msk.f32.vlgmr.msra.gmra.mrb[2].mxu0 %vm183_vm2, %v2761_v46  ;;  %v3088_v1 = vsel %vm1573_vm8, %v3079_v41, %v3081_v49 }
 0x2b3   :  { %v3091_v59 = vmul.f32 %v4023_v15, %v3087_v52  ;;  %2933 = vmatpush1.msra.mxu0 %v2923_v47  ;;  %3320 = vmatmul.mubr.msk.f32.vlgmr.msra.gmra.mrb[2].mxu1 %vm183_vm2, %v2761_v46  ;;  %v3090_v58 = vmul.f32 %v4027_v22, %v3088_v1 }
 0x2b4   :  { %3004 = vmatpush1.msra.mxu1 %v2925_v51  ;;  %2996 = vmatprep.mubr.f32.mxu0 %v3589_v0 }
 0x2b5   :  { %v3085_v8 = vpop.permute.xlu1 %3084  ;;  %3099 = vmatprep.subr.mxu0 %v3091_v59  ;;  %3067 = vmatprep.mubr.f32.mxu1 %v3589_v0 }
 0x2b6   :  { %v3089_v56 = vsel %vm1573_vm8, %v3085_v8, %v3079_v41  ;;  %v3086_v55 = vsel %vm1573_vm8, %v3083_v48, %v3085_v8 }
 0x2b7   :  { %v3093_v15 = vmul.f32 %v4025_v17, %v3089_v56  ;;  %v3092_v60 = vmul.f32 %v4031_v38, %v3086_v55 }
 0x2b9   :  { %3170 = vmatprep.subr.mxu1 %v3093_v15 }
 0x2ba   :  { %3321 = vmatmul.mubr.msk.f32.vlgmr.msra.gmra.mrb[2].mxu0 %vm183_vm2, %v2928_v57 }
 0x2bb   :  { %3100 = vmatpush1.msra.mxu0 %v3090_v58  ;;  %3322 = vmatmul.mubr.msk.f32.vlgmr.msra.gmra.mrb[2].mxu1 %vm183_vm2, %v2928_v57 }
 0x2bc   :  { %3171 = vmatpush1.msra.mxu1 %v3092_v60  ;;  %3163 = vmatprep.mubr.f32.mxu0 %v3589_v0 }
 0x2bd   :  { %3234 = vmatprep.mubr.f32.mxu1 %v3589_v0 }
 0x2be   :  { %v3249_v17 = vpop.permute.xlu0 %3248 }
 0x2c2   :  { %3323 = vmatmul.mubr.msk.f32.vlgmr.msra.gmra.mrb[2].mxu0 %vm183_vm2, %v3095_v9 }
 0x2c3   :  { %3324 = vmatmul.mubr.msk.f32.vlgmr.msra.gmra.mrb[2].mxu1 %vm183_vm2, %v3095_v9 }
 0x395   :  { %v3165_v22 = vpop.f32.mrb[2].mxu0 }
 0x396   :  { %v3251_v19 = vadd.f32 %v3249_v17, %v3165_v22  ;;  %v3167_v16 = vpop.f32.mrb[3].mxu0  ;;  %v3236_v38 = vpop.f32.mrb[2].mxu1 }
 0x397   :  { %v3252_v61 = vadd.f32 %v3249_v17, %v3167_v16  ;;  %v3253_v10 = vadd.f32 %v3249_v17, %v3236_v38  ;;  %v3238_v12 = vpop.f32.mrb[3].mxu1 }
 0x398   :  { %v3255_v20 = vadd.f32 %v3411_v18, %v3251_v19  ;;  %v3254_v21 = vadd.f32 %v3249_v17, %v3238_v12 }
 0x399   :  { %v3256_v26 = vadd.f32 %v3412_v13, %v3252_v61  ;;  %v3257_v0 = vadd.f32 %v3413_v30, %v3253_v10 }
 0x39a   :  { %v3259_v29 = vmax.f32 %v3255_v20, 0.0  ;;  %v3258_v5 = vadd.f32 %v3414_v27, %v3254_v21 }
 0x39b   :  { %v3260_v63 = vmax.f32 %v3256_v26, 0.0  ;;  %v3261_v32 = vmax.f32 %v3257_v0, 0.0 }
 0x39c   :  { %3263 = vst [vmem:[#allocation13] sm:$0xff] %v3259_v29  ;;  %v3262_v31 = vmax.f32 %v3258_v5, 0.0 }
 0x39d   :  { %3264 = vst [vmem:[#allocation13 + $0x8] sm:$0xff] %v3260_v63  ;;  %3265 = vst [vmem:[#allocation13 + $0x10] sm:$0xff] %v3261_v32 }
 0x39e   :  { %3266 = vst [vmem:[#allocation13 + $0x18] sm:$0xff] %v3262_v31 }
 0x39f   :  { %3558 = shalt.err (!%p3555_p10)
}
 0x3a0   :  { %s3559_s29 = scalar_lea.hbm %s4281_s6, 512 }
 0x3a1   :  { %p3560_p11 = scmp.ne.s32.totalorder %s4281_s6, %s3559_s29  ;;  %p3563_p12 = scmp.lt.u32.totalorder %s3559_s29, %s4281_s6 }
 0x3a3   :  { %p3565_p13 = pnand %p3563_p12, %p3560_p11 }
 0x3a5   :  { %3568 = shalt.err (!%p3565_p13)
}
 0x3a6   :  { %3276 = dma.vmem_to_hbm [thread:$0]  %s3274_s25, 512, %s4281_s6, [#allocation4]  }
 0x3a7   :  { %3577 = dma.done.wait [#allocation4], 512  }
 0x3a8   :  { %3578 = vsyncadd [#allocation4], 4294966784 }
 0x3a9   :  { %3280 = vsyncpa [#allocation3], 1 }
 0x3aa   :  { %3281 = vsyncpa [#allocation6], 1 }
 0x3ab   :  { %3282 = vsyncpa [#allocation9], 1 }
 0x3ac   :  { %3283 = vsyncpa [#allocation12], 1 }
 0x3ad   :  { %3284 = vsyncpa [#allocation4], 1 }

</bundles_post_ra>
